<compile_context>
chip_gen: v6e
topology: v6e:2x2x1
jax: 0.10.0
libtpu: 0.0.40
codegen_flags: <defaults>
</compile_context>

<pallas_src>
import functools

import jax
import jax.numpy as jnp
from jax.experimental import pallas as pl
from jax.experimental.pallas import tpu as pltpu


def _layer_norm(x, gamma, beta, eps=1e-5):
    mean = jnp.mean(x, axis=-1, keepdims=True)
    xc = x - mean
    var = jnp.mean(xc * xc, axis=-1, keepdims=True)
    return xc * jax.lax.rsqrt(var + eps) * gamma + beta


def _mha(xq_b, xkv_b, bb, s_q, s_kv,
         wq, bq, wk, bk, wv, bv, wo, bo, num_heads, mask=None):
    """Multi-head attention on row-batched bf16 activations.

    xq_b: [bb*s_q, D] bf16, xkv_b: [bb*s_kv, D] bf16.
    Weights are bf16 [D, D]; biases f32 [1, D]. `mask` (optional) is an
    additive f32 mask broadcastable to [bb, s_q, s_kv].
    """
    m_q, d = xq_b.shape
    dh = d // num_heads
    scale = 1.0 / (dh ** 0.5)
    bf16 = jnp.bfloat16

    # Fused QKV projections: K = D matmuls on the MXU, f32 accumulation.
    q = jnp.dot(xq_b, wq, preferred_element_type=jnp.float32) + bq    # [Mq, D]
    k = jnp.dot(xkv_b, wk, preferred_element_type=jnp.float32) + bk   # [Mkv, D]
    v = jnp.dot(xkv_b, wv, preferred_element_type=jnp.float32) + bv   # [Mkv, D]

    # Hoist the 1/sqrt(dh) scale out of the per-head loop.
    q = (q * scale).astype(bf16).reshape(bb, s_q, d)
    k = k.astype(bf16).reshape(bb, s_kv, d)
    v = v.astype(bf16).reshape(bb, s_kv, d)

    # Per-head scores / PV (inherently K=dh / K=s_kv on the MXU).  Head outputs
    # are laid side-by-side along the lane dim and folded into ONE K = D output
    # projection instead of H small K=dh matmuls.
    # (Heads could also be batched into a single dot_general with Q/K/V shaped
    #  [bb*H, s, dh]; that trades the per-head lane slices below for three
    #  head-interleave transposes — kept per-head here for lowering robustness.)
    head_outs = []
    for h in range(num_heads):                       # static unroll over heads
        sl = slice(h * dh, (h + 1) * dh)
        scores = jax.lax.dot_general(                # [bb, s_q, s_kv] f32
            q[:, :, sl], k[:, :, sl], (((2,), (2,)), ((0,), (0,))),
            preferred_element_type=jnp.float32)
        if mask is not None:
            scores = scores + mask
        scores = scores - jnp.max(scores, axis=-1, keepdims=True)
        p = jnp.exp(scores)
        p = p * pl.reciprocal(jnp.sum(p, axis=-1, keepdims=True), approx=True)
        head_outs.append(jax.lax.dot_general(        # [bb, s_q, dh] f32
            p.astype(bf16), v[:, :, sl], (((2,), (1,)), ((0,), (0,))),
            preferred_element_type=jnp.float32))

    o = jnp.concatenate(head_outs, axis=-1)          # [bb, s_q, D], heads on lanes
    o = o.reshape(m_q, d).astype(bf16)
    # Single full-width output projection (K = D keeps the MXU fed).
    return jnp.dot(o, wo, preferred_element_type=jnp.float32) + bo


def fused_decoder_kernel(x_ref, enc_ref, mask_ref,
                         wattn_ref, battn_ref,
                         w1_ref, b1_ref, w2_ref, b2_ref,
                         lng_ref, lnb_ref,
                         out_ref, x_scr, *, num_heads, ffn_chunk):
    l = pl.program_id(1)
    bb, s, d = x_ref.shape
    t = enc_ref.shape[1]
    m = bb * s
    bf16 = jnp.bfloat16

    # Layer 0 of each batch block: load the decoder input into the resident
    # VMEM activation scratch.  (Input / encoder / mask blocks only re-DMA at
    # batch-block boundaries since their index_map is constant along l.)
    @pl.when(l == 0)
    def _():
        x_scr[...] = x_ref[...].reshape(m, d)

    x = x_scr[...]                             # [M, D] f32 resident activation
    enc_b = enc_ref[...].reshape(bb * t, d)    # [BB*T, D] bf16 (cast once in wrapper)
    mask = mask_ref[...]                       # [S, S] or [BB, S, S] f32

    # --- masked multi-head self-attention + add & LN ---
    x_b = x.astype(bf16)                       # one f32->bf16 cast reused for Q and KV
    sa = _mha(x_b, x_b, bb, s, s,
              wattn_ref[0, 0], battn_ref[0, 0],
              wattn_ref[0, 1], battn_ref[0, 1],
              wattn_ref[0, 2], battn_ref[0, 2],
              wattn_ref[0, 3], battn_ref[0, 3],
              num_heads, mask=mask)
    x = _layer_norm(x + sa, lng_ref[0, 0], lnb_ref[0, 0])

    # --- multi-head cross-attention over encoder_result + add & LN ---
    ca = _mha(x.astype(bf16), enc_b, bb, s, t,
              wattn_ref[0, 4], battn_ref[0, 4],
              wattn_ref[0, 5], battn_ref[0, 5],
              wattn_ref[0, 6], battn_ref[0, 6],
              wattn_ref[0, 7], battn_ref[0, 7],
              num_heads, mask=None)
    x = _layer_norm(x + ca, lng_ref[0, 1], lnb_ref[0, 1])

    # --- position-wise ReLU FFN + add & LN, tiled over the hidden dim F ---
    # Avoids materializing the full [M, F] f32 hidden activation in VMEM.
    x_b = x.astype(bf16)
    f_total = w1_ref.shape[2]
    ffn = jnp.zeros((m, d), jnp.float32)
    for c0 in range(0, f_total, ffn_chunk):    # static unroll over F chunks
        ce = min(ffn_chunk, f_total - c0)
        hid = jnp.dot(x_b, w1_ref[0, :, c0:c0 + ce],
                      preferred_element_type=jnp.float32) + b1_ref[0, :, c0:c0 + ce]
        hid = jnp.maximum(hid, 0.0)
        ffn = ffn + jnp.dot(hid.astype(bf16), w2_ref[0, c0:c0 + ce, :],
                            preferred_element_type=jnp.float32)
    x = _layer_norm(x + ffn + b2_ref[0], lng_ref[0, 2], lnb_ref[0, 2])

    x_scr[...] = x

    # Only the last layer writes the output block back to HBM.
    @pl.when(l == pl.num_programs(1) - 1)
    def _():
        out_ref[...] = x.reshape(bb, s, d).astype(out_ref.dtype)


def _device_kind():
    try:
        return jax.devices()[0].device_kind.lower()
    except Exception:  # pragma: no cover
        return ""


def sequential_decoder(decoder_input, encoder_result, mask, layer_params, *,
                       num_heads, batch_block=None, vmem_limit_bytes=None,
                       ffn_chunk=512, conserve_vmem=None):
    """Mirror of SequentialDecoder.forward with the layer loop fused in-kernel."""
    B, S, D = decoder_input.shape
    T = encoder_result.shape[1]
    L = len(layer_params)
    F = layer_params[0]["w1"].shape[1]
    assert D % num_heads == 0

    # Stack per-layer parameters along a leading L axis so a single grid axis
    # walks the layer stack.  Matmul weights in bf16 (halves weight DMA, native
    # MXU dtype); biases / LN params stay f32 with a leading 1 for clean
    # 2-D broadcasts inside the kernel.
    bf16, f32 = jnp.bfloat16, jnp.float32
    wattn = jnp.stack([p["wattn"] for p in layer_params]).astype(bf16)              # [L,8,D,D]
    battn = jnp.stack([p["battn"] for p in layer_params]).astype(f32)[:, :, None, :]  # [L,8,1,D]
    w1 = jnp.stack([p["w1"] for p in layer_params]).astype(bf16)                    # [L,D,F]
    b1 = jnp.stack([p["b1"] for p in layer_params]).astype(f32)[:, None, :]         # [L,1,F]
    w2 = jnp.stack([p["w2"] for p in layer_params]).astype(bf16)                    # [L,F,D]
    b2 = jnp.stack([p["b2"] for p in layer_params]).astype(f32)[:, None, :]         # [L,1,D]
    lng = jnp.stack([p["lng"] for p in layer_params]).astype(f32)[:, :, None, :]    # [L,3,1,D]
    lnb = jnp.stack([p["lnb"] for p in layer_params]).astype(f32)[:, :, None, :]    # [L,3,1,D]

    # encoder_result is only a bf16 KV source: cast once here instead of a
    # per-layer f32->bf16 cast of a [BB*T, D] block, and halve its VMEM/DMA.
    enc_b = encoder_result.astype(bf16)

    kind = _device_kind()

    # Generation-aware batch split: v7x has 2 TensorCores per chip, so exactly
    # two "parallel" batch blocks shard across them; v5e/v6e have one TC where
    # a split only shrinks M = BB*S and re-streams the weight stack per block.
    if batch_block is None:
        if "v7" in kind and B >= 2 and B % 2 == 0:
            batch_block = B // 2
        else:
            batch_block = B
    assert B % batch_block == 0
    BB = batch_block
    nb = B // BB
    M = BB * S  # MXU row count; ideally a multiple of 256 (v6e/v7x) / 128 (v5e)

    # Scoped VMEM budget: v5e/v6e have 128 MiB physical (scoped default is far
    # lower); v7x only has 64 MiB, so leave headroom there.
    if vmem_limit_bytes is None:
        if "v7" in kind:
            vmem_limit_bytes = 48 * 1024 * 1024
        elif "v5" in kind or "v6" in kind:
            vmem_limit_bytes = 100 * 1024 * 1024
        else:
            vmem_limit_bytes = 64 * 1024 * 1024

    ffn_chunk = max(1, min(int(ffn_chunk), F))

    # At deployment sizes (D>=1024, F>=4096) the default double-buffered weight
    # blocks (~32 MiB/layer x 2) overflow v7x VMEM: drop weights and the
    # layer-invariant activation/mask blocks to single buffering.
    # TODO(synk): for even larger layers, stream wattn/w1/w2 per-matrix from
    # HBM (memory_space=pl.ANY + pltpu.emit_pipeline) instead of full blocks.
    weight_block_bytes = (8 * D * D + 2 * D * F) * 2  # bf16
    if conserve_vmem is None:
        conserve_vmem = 2 * weight_block_bytes > vmem_limit_bytes // 2

    def _spec(shape, index_map, single_buffer):
        if single_buffer:
            return pl.BlockSpec(shape, index_map, pipeline_mode=pl.Buffered(1))
        return pl.BlockSpec(shape, index_map)

    # Accept either a shared [S, S] additive mask (one HBM fetch total) or a
    # per-batch [B, S, S] mask (original module semantics).
    if mask.ndim == 2:
        mask_spec = _spec((S, S), lambda b, l: (0, 0), conserve_vmem)
    else:
        mask_spec = _spec((BB, S, S), lambda b, l: (b, 0, 0), conserve_vmem)

    # Advisory cost estimate: this one fused call covers the whole stack.
    flops_per_layer = (8 * B * S * D * D                       # self-attn QKVO
                       + 4 * B * S * D * D + 4 * B * T * D * D  # cross-attn Q,O / K,V
                       + 4 * B * S * S * D + 4 * B * S * T * D  # scores + PV
                       + 4 * B * S * D * F)                     # FFN
    cost = pl.CostEstimate(
        flops=int(L * flops_per_layer),
        transcendentals=int(L * B * num_heads * (S * S + S * T)),
        bytes_accessed=int(nb * L * weight_block_bytes
                           + 2 * B * S * D * 4 + B * T * D * 2 + int(mask.size) * 4))

    kernel = functools.partial(fused_decoder_kernel, num_heads=num_heads,
                               ffn_chunk=ffn_chunk)
    return pl.pallas_call(
        kernel,
        out_shape=jax.ShapeDtypeStruct((B, S, D), decoder_input.dtype),
        grid=(nb, L),
        in_specs=[
            _spec((BB, S, D), lambda b, l: (b, 0, 0), conserve_vmem),       # decoder input (f32)
            _spec((BB, T, D), lambda b, l: (b, 0, 0), conserve_vmem),       # encoder result (bf16)
            mask_spec,                                                      # additive mask (f32)
            _spec((1, 8, D, D), lambda b, l: (l, 0, 0, 0), conserve_vmem),  # attn weights
            pl.BlockSpec((1, 8, 1, D), lambda b, l: (l, 0, 0, 0)),          # attn biases
            _spec((1, D, F), lambda b, l: (l, 0, 0), conserve_vmem),        # ffn W1
            pl.BlockSpec((1, 1, F), lambda b, l: (l, 0, 0)),                # ffn b1
            _spec((1, F, D), lambda b, l: (l, 0, 0), conserve_vmem),        # ffn W2
            pl.BlockSpec((1, 1, D), lambda b, l: (l, 0, 0)),                # ffn b2
            pl.BlockSpec((1, 3, 1, D), lambda b, l: (l, 0, 0, 0)),          # LN gammas
            pl.BlockSpec((1, 3, 1, D), lambda b, l: (l, 0, 0, 0)),          # LN betas
        ],
        out_specs=pl.BlockSpec((BB, S, D), lambda b, l: (b, 0, 0)),
        scratch_shapes=[pltpu.VMEM((M, D), jnp.float32)],                   # resident activation
        compiler_params=pltpu.CompilerParams(
            dimension_semantics=("parallel", "arbitrary"),
            vmem_limit_bytes=vmem_limit_bytes),
        cost_estimate=cost,
    )(decoder_input, enc_b, mask, wattn, battn, w1, b1, w2, b2, lng, lnb)


def init_layer_params(key, d_model, d_ff):
    ks = jax.random.split(key, 3)
    scale = 1.0 / (d_model ** 0.5)
    return {
        # 8 = [self_q, self_k, self_v, self_o, cross_q, cross_k, cross_v, cross_o]
        "wattn": jax.random.normal(ks[0], (8, d_model, d_model), jnp.float32) * scale,
        "battn": jnp.zeros((8, d_model), jnp.float32),
        "w1": jax.random.normal(ks[1], (d_model, d_ff), jnp.float32) * scale,
        "b1": jnp.zeros((d_ff,), jnp.float32),
        "w2": jax.random.normal(ks[2], (d_ff, d_model),
                                jnp.float32) * (1.0 / (d_ff ** 0.5)),
        "b2": jnp.zeros((d_model,), jnp.float32),
        "lng": jnp.ones((3, d_model), jnp.float32),
        "lnb": jnp.zeros((3, d_model), jnp.float32),
    }


if __name__ == "__main__":
    B, S, T, D, H, F, L = 2, 8, 8, 32, 2, 64, 2

    key = jax.random.PRNGKey(0)
    k_dec, k_enc, k_layers = jax.random.split(key, 3)

    decoder_input = jax.random.normal(k_dec, (B, S, D), jnp.float32)
    encoder_result = jax.random.normal(k_enc, (B, T, D), jnp.float32)

    # Shared causal additive mask [S, S] (applied to self-attention logits).
    causal = jnp.tril(jnp.ones((S, S), jnp.float32))
    mask = jnp.where(causal > 0, 0.0, -1e9).astype(jnp.float32)

    layer_params = [
        init_layer_params(k, D, F) for k in jax.random.split(k_layers, L)
    ]

    out = sequential_decoder(decoder_input, encoder_result, mask,
                             layer_params, num_heads=H)
    out = jax.block_until_ready(out)
    assert out.shape == (B, S, D) and out.dtype == jnp.float32
    assert bool(jnp.all(jnp.isfinite(out)))
    print("KERNEL_OK")
</pallas_src>

<mosaic_0001>
module attributes {stable_mosaic.version = 11 : i64} {
  func.func @fused_decoder_kernel(%arg0: i32, %arg1: i32, %arg2: memref<2x8x32xf32, #tpu.memory_space<vmem>>, %arg3: memref<2x8x32xbf16, #tpu.memory_space<vmem>>, %arg4: memref<8x8xf32, #tpu.memory_space<vmem>>, %arg5: memref<1x8x32x32xbf16, #tpu.memory_space<vmem>>, %arg6: memref<1x8x1x32xf32, #tpu.memory_space<vmem>>, %arg7: memref<1x32x64xbf16, #tpu.memory_space<vmem>>, %arg8: memref<1x1x64xf32, #tpu.memory_space<vmem>>, %arg9: memref<1x64x32xbf16, #tpu.memory_space<vmem>>, %arg10: memref<1x1x32xf32, #tpu.memory_space<vmem>>, %arg11: memref<1x3x1x32xf32, #tpu.memory_space<vmem>>, %arg12: memref<1x3x1x32xf32, #tpu.memory_space<vmem>>, %arg13: memref<2x8x32xf32, #tpu.memory_space<vmem>>, %arg14: memref<16x32xf32, #tpu.memory_space<vmem>>) attributes {dimension_semantics = [#tpu.dimension_semantics<parallel>, #tpu.dimension_semantics<arbitrary>], iteration_bounds = array<i64: 1, 2>, scalar_prefetch = 0 : i64, scratch_operands = 1 : i64, tpu.core_type = #tpu.core_type<tc>, window_params = [{transform_indices = @transform_0, window_bounds = array<i64: 2, 8, 32>}, {transform_indices = @transform_1, window_bounds = array<i64: 2, 8, 32>}, {pipeline_mode = #tpu.pipeline_mode<synchronous>, transform_indices = @transform_2, window_bounds = array<i64: 8, 8>}, {transform_indices = @transform_3, window_bounds = array<i64: 1, 8, 32, 32>}, {transform_indices = @transform_4, window_bounds = array<i64: 1, 8, 1, 32>}, {transform_indices = @transform_5, window_bounds = array<i64: 1, 32, 64>}, {transform_indices = @transform_6, window_bounds = array<i64: 1, 1, 64>}, {transform_indices = @transform_7, window_bounds = array<i64: 1, 64, 32>}, {transform_indices = @transform_8, window_bounds = array<i64: 1, 1, 32>}, {transform_indices = @transform_9, window_bounds = array<i64: 1, 3, 1, 32>}, {transform_indices = @transform_10, window_bounds = array<i64: 1, 3, 1, 32>}, {transform_indices = @transform_11, window_bounds = array<i64: 2, 8, 32>}]} {
    %c0_i32 = arith.constant 0 : i32
    %0 = arith.cmpi eq, %arg1, %c0_i32 : i32
    %1 = arith.extui %0 : i1 to i32
    %c0_i32_0 = arith.constant 0 : i32
    %2 = arith.cmpi ne, %1, %c0_i32_0 : i32
    scf.if %2 {
      %c0_147 = arith.constant 0 : index
      %c0_148 = arith.constant 0 : index
      %c0_149 = arith.constant 0 : index
      %256 = vector.load %arg2[%c0_147, %c0_148, %c0_149] : memref<2x8x32xf32, #tpu.memory_space<vmem>>, vector<2x8x32xf32>
      %257 = vector.shape_cast %256 : vector<2x8x32xf32> to vector<16x32xf32>
      %c0_150 = arith.constant 0 : index
      %c0_151 = arith.constant 0 : index
      %258 = vector.load %arg14[%c0_150, %c0_151] : memref<16x32xf32, #tpu.memory_space<vmem>>, vector<16x32xf32>
      tpu.vector_store %arg14[%c0_150, %c0_151], %257 {strides = array<i32>} : memref<16x32xf32, #tpu.memory_space<vmem>>, vector<16x32xf32>,
    } else {
    }
    %c0 = arith.constant 0 : index
    %c0_1 = arith.constant 0 : index
    %3 = vector.load %arg14[%c0, %c0_1] : memref<16x32xf32, #tpu.memory_space<vmem>>, vector<16x32xf32>
    %c0_2 = arith.constant 0 : index
    %c0_3 = arith.constant 0 : index
    %c0_4 = arith.constant 0 : index
    %4 = vector.load %arg3[%c0_2, %c0_3, %c0_4] : memref<2x8x32xbf16, #tpu.memory_space<vmem>>, vector<2x8x32xbf16>
    %5 = vector.shape_cast %4 : vector<2x8x32xbf16> to vector<16x32xbf16>
    %c0_5 = arith.constant 0 : index
    %c0_6 = arith.constant 0 : index
    %6 = vector.load %arg4[%c0_5, %c0_6] : memref<8x8xf32, #tpu.memory_space<vmem>>, vector<8x8xf32>
    %7 = arith.truncf %3 : vector<16x32xf32> to vector<16x32xbf16>
    %c0_7 = arith.constant 0 : index
    %c0_8 = arith.constant 0 : index
    %c0_9 = arith.constant 0 : index
    %c0_10 = arith.constant 0 : index
    %8 = vector.load %arg5[%c0_7, %c0_8, %c0_9, %c0_10] : memref<1x8x32x32xbf16, #tpu.memory_space<vmem>>, vector<1x1x32x32xbf16>
    %9 = vector.shape_cast %8 : vector<1x1x32x32xbf16> to vector<32x32xbf16>
    %c0_11 = arith.constant 0 : index
    %c0_12 = arith.constant 0 : index
    %c0_13 = arith.constant 0 : index
    %c0_14 = arith.constant 0 : index
    %10 = vector.load %arg6[%c0_11, %c0_12, %c0_13, %c0_14] : memref<1x8x1x32xf32, #tpu.memory_space<vmem>>, vector<1x1x1x32xf32>
    %11 = vector.shape_cast %10 : vector<1x1x1x32xf32> to vector<1x32xf32>
    %c0_15 = arith.constant 0 : index
    %c1 = arith.constant 1 : index
    %c0_16 = arith.constant 0 : index
    %c0_17 = arith.constant 0 : index
    %12 = vector.load %arg5[%c0_15, %c1, %c0_16, %c0_17] : memref<1x8x32x32xbf16, #tpu.memory_space<vmem>>, vector<1x1x32x32xbf16>
    %13 = vector.shape_cast %12 : vector<1x1x32x32xbf16> to vector<32x32xbf16>
    %c0_18 = arith.constant 0 : index
    %c1_19 = arith.constant 1 : index
    %c0_20 = arith.constant 0 : index
    %c0_21 = arith.constant 0 : index
    %14 = vector.load %arg6[%c0_18, %c1_19, %c0_20, %c0_21] : memref<1x8x1x32xf32, #tpu.memory_space<vmem>>, vector<1x1x1x32xf32>
    %15 = vector.shape_cast %14 : vector<1x1x1x32xf32> to vector<1x32xf32>
    %c0_22 = arith.constant 0 : index
    %c2 = arith.constant 2 : index
    %c0_23 = arith.constant 0 : index
    %c0_24 = arith.constant 0 : index
    %16 = vector.load %arg5[%c0_22, %c2, %c0_23, %c0_24] : memref<1x8x32x32xbf16, #tpu.memory_space<vmem>>, vector<1x1x32x32xbf16>
    %17 = vector.shape_cast %16 : vector<1x1x32x32xbf16> to vector<32x32xbf16>
    %c0_25 = arith.constant 0 : index
    %c2_26 = arith.constant 2 : index
    %c0_27 = arith.constant 0 : index
    %c0_28 = arith.constant 0 : index
    %18 = vector.load %arg6[%c0_25, %c2_26, %c0_27, %c0_28] : memref<1x8x1x32xf32, #tpu.memory_space<vmem>>, vector<1x1x1x32xf32>
    %19 = vector.shape_cast %18 : vector<1x1x1x32xf32> to vector<1x32xf32>
    %c0_29 = arith.constant 0 : index
    %c3 = arith.constant 3 : index
    %c0_30 = arith.constant 0 : index
    %c0_31 = arith.constant 0 : index
    %20 = vector.load %arg5[%c0_29, %c3, %c0_30, %c0_31] : memref<1x8x32x32xbf16, #tpu.memory_space<vmem>>, vector<1x1x32x32xbf16>
    %21 = vector.shape_cast %20 : vector<1x1x32x32xbf16> to vector<32x32xbf16>
    %c0_32 = arith.constant 0 : index
    %c3_33 = arith.constant 3 : index
    %c0_34 = arith.constant 0 : index
    %c0_35 = arith.constant 0 : index
    %22 = vector.load %arg6[%c0_32, %c3_33, %c0_34, %c0_35] : memref<1x8x1x32xf32, #tpu.memory_space<vmem>>, vector<1x1x1x32xf32>
    %23 = vector.shape_cast %22 : vector<1x1x1x32xf32> to vector<1x32xf32>
    %cst = arith.constant dense<0.000000e+00> : vector<16x32xf32>
    %24 = tpu.matmul %7, %9, %cst {dimension_numbers = #tpu.dot_dimension_numbers<[1], [0], [0], [1], [0, 0, 1, 1], [], []>} : vector<16x32xbf16>, vector<32x32xbf16>, vector<16x32xf32> -> vector<16x32xf32>
    %25 = vector.broadcast %11 : vector<1x32xf32> to vector<16x32xf32>
    %26 = arith.addf %24, %25 : vector<16x32xf32>
    %cst_36 = arith.constant dense<0.000000e+00> : vector<16x32xf32>
    %27 = tpu.matmul %7, %13, %cst_36 {dimension_numbers = #tpu.dot_dimension_numbers<[1], [0], [0], [1], [0, 0, 1, 1], [], []>} : vector<16x32xbf16>, vector<32x32xbf16>, vector<16x32xf32> -> vector<16x32xf32>
    %28 = vector.broadcast %15 : vector<1x32xf32> to vector<16x32xf32>
    %29 = arith.addf %27, %28 : vector<16x32xf32>
    %cst_37 = arith.constant dense<0.000000e+00> : vector<16x32xf32>
    %30 = tpu.matmul %7, %17, %cst_37 {dimension_numbers = #tpu.dot_dimension_numbers<[1], [0], [0], [1], [0, 0, 1, 1], [], []>} : vector<16x32xbf16>, vector<32x32xbf16>, vector<16x32xf32> -> vector<16x32xf32>
    %31 = vector.broadcast %19 : vector<1x32xf32> to vector<16x32xf32>
    %32 = arith.addf %30, %31 : vector<16x32xf32>
    %cst_38 = arith.constant 2.500000e-01 : f32
    %33 = vector.broadcast %cst_38 : f32 to vector<16x32xf32>
    %34 = arith.mulf %26, %33 : vector<16x32xf32>
    %35 = arith.truncf %34 : vector<16x32xf32> to vector<16x32xbf16>
    %36 = vector.shape_cast %35 : vector<16x32xbf16> to vector<2x8x32xbf16>
    %37 = arith.truncf %29 : vector<16x32xf32> to vector<16x32xbf16>
    %38 = vector.shape_cast %37 : vector<16x32xbf16> to vector<2x8x32xbf16>
    %39 = arith.truncf %32 : vector<16x32xf32> to vector<16x32xbf16>
    %40 = vector.shape_cast %39 : vector<16x32xbf16> to vector<2x8x32xbf16>
    %41 = vector.extract_strided_slice %36 {offsets = [0, 0, 0], sizes = [2, 8, 16], strides = [1, 1, 1]} : vector<2x8x32xbf16> to vector<2x8x16xbf16>
    %42 = vector.extract_strided_slice %38 {offsets = [0, 0, 0], sizes = [2, 8, 16], strides = [1, 1, 1]} : vector<2x8x32xbf16> to vector<2x8x16xbf16>
    %cst_39 = arith.constant dense<0.000000e+00> : vector<2x8x8xf32>
    %43 = tpu.matmul %41, %42, %cst_39 {dimension_numbers = #tpu.dot_dimension_numbers<[2], [2], [1], [1], [0, 0, 0, 1, 1, 1], [0], [0]>} : vector<2x8x16xbf16>, vector<2x8x16xbf16>, vector<2x8x8xf32> -> vector<2x8x8xf32>
    %44 = vector.shape_cast %6 : vector<8x8xf32> to vector<1x8x8xf32>
    %45 = vector.broadcast %44 : vector<1x8x8xf32> to vector<2x8x8xf32>
    %46 = arith.addf %43, %45 : vector<2x8x8xf32>
    %cst_40 = arith.constant dense<0xFF800000> : vector<2x8xf32>
    %47 = vector.multi_reduction <maximumf>, %46, %cst_40 [2] : vector<2x8x8xf32> to vector<2x8xf32>
    %48 = vector.shape_cast %47 : vector<2x8xf32> to vector<2x8x1xf32>
    %49 = vector.broadcast %48 : vector<2x8x1xf32> to vector<2x8x8xf32>
    %50 = arith.subf %46, %49 : vector<2x8x8xf32>
    %51 = math.exp %50 : vector<2x8x8xf32>
    %cst_41 = arith.constant dense<0.000000e+00> : vector<2x8xf32>
    %52 = vector.multi_reduction <add>, %51, %cst_41 [2] : vector<2x8x8xf32> to vector<2x8xf32>
    %53 = vector.shape_cast %52 : vector<2x8xf32> to vector<2x8x1xf32>
    %54 = tpu.reciprocal %53 {approx = true} : vector<2x8x1xf32> -> vector<2x8x1xf32>
    %55 = vector.broadcast %54 : vector<2x8x1xf32> to vector<2x8x8xf32>
    %56 = arith.mulf %51, %55 : vector<2x8x8xf32>
    %57 = arith.truncf %56 : vector<2x8x8xf32> to vector<2x8x8xbf16>
    %58 = vector.extract_strided_slice %40 {offsets = [0, 0, 0], sizes = [2, 8, 16], strides = [1, 1, 1]} : vector<2x8x32xbf16> to vector<2x8x16xbf16>
    %cst_42 = arith.constant dense<0.000000e+00> : vector<2x8x16xf32>
    %59 = tpu.matmul %57, %58, %cst_42 {dimension_numbers = #tpu.dot_dimension_numbers<[2], [1], [1], [2], [0, 0, 0, 1, 1, 2], [0], [0]>} : vector<2x8x8xbf16>, vector<2x8x16xbf16>, vector<2x8x16xf32> -> vector<2x8x16xf32>
    %60 = vector.extract_strided_slice %36 {offsets = [0, 0, 16], sizes = [2, 8, 16], strides = [1, 1, 1]} : vector<2x8x32xbf16> to vector<2x8x16xbf16>
    %61 = vector.extract_strided_slice %38 {offsets = [0, 0, 16], sizes = [2, 8, 16], strides = [1, 1, 1]} : vector<2x8x32xbf16> to vector<2x8x16xbf16>
    %cst_43 = arith.constant dense<0.000000e+00> : vector<2x8x8xf32>
    %62 = tpu.matmul %60, %61, %cst_43 {dimension_numbers = #tpu.dot_dimension_numbers<[2], [2], [1], [1], [0, 0, 0, 1, 1, 1], [0], [0]>} : vector<2x8x16xbf16>, vector<2x8x16xbf16>, vector<2x8x8xf32> -> vector<2x8x8xf32>
    %63 = vector.shape_cast %6 : vector<8x8xf32> to vector<1x8x8xf32>
    %64 = vector.broadcast %63 : vector<1x8x8xf32> to vector<2x8x8xf32>
    %65 = arith.addf %62, %64 : vector<2x8x8xf32>
    %cst_44 = arith.constant dense<0xFF800000> : vector<2x8xf32>
    %66 = vector.multi_reduction <maximumf>, %65, %cst_44 [2] : vector<2x8x8xf32> to vector<2x8xf32>
    %67 = vector.shape_cast %66 : vector<2x8xf32> to vector<2x8x1xf32>
    %68 = vector.broadcast %67 : vector<2x8x1xf32> to vector<2x8x8xf32>
    %69 = arith.subf %65, %68 : vector<2x8x8xf32>
    %70 = math.exp %69 : vector<2x8x8xf32>
    %cst_45 = arith.constant dense<0.000000e+00> : vector<2x8xf32>
    %71 = vector.multi_reduction <add>, %70, %cst_45 [2] : vector<2x8x8xf32> to vector<2x8xf32>
    %72 = vector.shape_cast %71 : vector<2x8xf32> to vector<2x8x1xf32>
    %73 = tpu.reciprocal %72 {approx = true} : vector<2x8x1xf32> -> vector<2x8x1xf32>
    %74 = vector.broadcast %73 : vector<2x8x1xf32> to vector<2x8x8xf32>
    %75 = arith.mulf %70, %74 : vector<2x8x8xf32>
    %76 = arith.truncf %75 : vector<2x8x8xf32> to vector<2x8x8xbf16>
    %77 = vector.extract_strided_slice %40 {offsets = [0, 0, 16], sizes = [2, 8, 16], strides = [1, 1, 1]} : vector<2x8x32xbf16> to vector<2x8x16xbf16>
    %cst_46 = arith.constant dense<0.000000e+00> : vector<2x8x16xf32>
    %78 = tpu.matmul %76, %77, %cst_46 {dimension_numbers = #tpu.dot_dimension_numbers<[2], [1], [1], [2], [0, 0, 0, 1, 1, 2], [0], [0]>} : vector<2x8x8xbf16>, vector<2x8x16xbf16>, vector<2x8x16xf32> -> vector<2x8x16xf32>
    %79 = tpu.concatenate %59, %78 in 2 : vector<2x8x16xf32>, vector<2x8x16xf32> -> vector<2x8x32xf32>
    %80 = vector.shape_cast %79 : vector<2x8x32xf32> to vector<16x32xf32>
    %81 = arith.truncf %80 : vector<16x32xf32> to vector<16x32xbf16>
    %cst_47 = arith.constant dense<0.000000e+00> : vector<16x32xf32>
    %82 = tpu.matmul %81, %21, %cst_47 {dimension_numbers = #tpu.dot_dimension_numbers<[1], [0], [0], [1], [0, 0, 1, 1], [], []>} : vector<16x32xbf16>, vector<32x32xbf16>, vector<16x32xf32> -> vector<16x32xf32>
    %83 = vector.broadcast %23 : vector<1x32xf32> to vector<16x32xf32>
    %84 = arith.addf %82, %83 : vector<16x32xf32>
    %85 = arith.addf %3, %84 : vector<16x32xf32>
    %c0_48 = arith.constant 0 : index
    %c0_49 = arith.constant 0 : index
    %c0_50 = arith.constant 0 : index
    %c0_51 = arith.constant 0 : index
    %86 = vector.load %arg11[%c0_48, %c0_49, %c0_50, %c0_51] : memref<1x3x1x32xf32, #tpu.memory_space<vmem>>, vector<1x1x1x32xf32>
    %87 = vector.shape_cast %86 : vector<1x1x1x32xf32> to vector<1x32xf32>
    %c0_52 = arith.constant 0 : index
    %c0_53 = arith.constant 0 : index
    %c0_54 = arith.constant 0 : index
    %c0_55 = arith.constant 0 : index
    %88 = vector.load %arg12[%c0_52, %c0_53, %c0_54, %c0_55] : memref<1x3x1x32xf32, #tpu.memory_space<vmem>>, vector<1x1x1x32xf32>
    %89 = vector.shape_cast %88 : vector<1x1x1x32xf32> to vector<1x32xf32>
    %cst_56 = arith.constant dense<0.000000e+00> : vector<16xf32>
    %90 = vector.multi_reduction <add>, %85, %cst_56 [1] : vector<16x32xf32> to vector<16xf32>
    %91 = vector.shape_cast %90 : vector<16xf32> to vector<16x1xf32>
    %cst_57 = arith.constant 3.200000e+01 : f32
    %92 = vector.broadcast %cst_57 : f32 to vector<16x1xf32>
    %93 = arith.divf %91, %92 : vector<16x1xf32>
    %94 = vector.broadcast %93 : vector<16x1xf32> to vector<16x32xf32>
    %95 = arith.subf %85, %94 : vector<16x32xf32>
    %96 = arith.mulf %95, %95 : vector<16x32xf32>
    %cst_58 = arith.constant dense<0.000000e+00> : vector<16xf32>
    %97 = vector.multi_reduction <add>, %96, %cst_58 [1] : vector<16x32xf32> to vector<16xf32>
    %98 = vector.shape_cast %97 : vector<16xf32> to vector<16x1xf32>
    %cst_59 = arith.constant 3.200000e+01 : f32
    %99 = vector.broadcast %cst_59 : f32 to vector<16x1xf32>
    %100 = arith.divf %98, %99 : vector<16x1xf32>
    %cst_60 = arith.constant 9.99999974E-6 : f32
    %101 = vector.broadcast %cst_60 : f32 to vector<16x1xf32>
    %102 = arith.addf %100, %101 : vector<16x1xf32>
    %103 = math.rsqrt %102 : vector<16x1xf32>
    %104 = vector.broadcast %103 : vector<16x1xf32> to vector<16x32xf32>
    %105 = arith.mulf %95, %104 : vector<16x32xf32>
    %106 = vector.broadcast %87 : vector<1x32xf32> to vector<16x32xf32>
    %107 = arith.mulf %105, %106 : vector<16x32xf32>
    %108 = vector.broadcast %89 : vector<1x32xf32> to vector<16x32xf32>
    %109 = arith.addf %107, %108 : vector<16x32xf32>
    %110 = arith.truncf %109 : vector<16x32xf32> to vector<16x32xbf16>
    %c0_61 = arith.constant 0 : index
    %c4 = arith.constant 4 : index
    %c0_62 = arith.constant 0 : index
    %c0_63 = arith.constant 0 : index
    %111 = vector.load %arg5[%c0_61, %c4, %c0_62, %c0_63] : memref<1x8x32x32xbf16, #tpu.memory_space<vmem>>, vector<1x1x32x32xbf16>
    %112 = vector.shape_cast %111 : vector<1x1x32x32xbf16> to vector<32x32xbf16>
    %c0_64 = arith.constant 0 : index
    %c4_65 = arith.constant 4 : index
    %c0_66 = arith.constant 0 : index
    %c0_67 = arith.constant 0 : index
    %113 = vector.load %arg6[%c0_64, %c4_65, %c0_66, %c0_67] : memref<1x8x1x32xf32, #tpu.memory_space<vmem>>, vector<1x1x1x32xf32>
    %114 = vector.shape_cast %113 : vector<1x1x1x32xf32> to vector<1x32xf32>
    %c0_68 = arith.constant 0 : index
    %c5 = arith.constant 5 : index
    %c0_69 = arith.constant 0 : index
    %c0_70 = arith.constant 0 : index
    %115 = vector.load %arg5[%c0_68, %c5, %c0_69, %c0_70] : memref<1x8x32x32xbf16, #tpu.memory_space<vmem>>, vector<1x1x32x32xbf16>
    %116 = vector.shape_cast %115 : vector<1x1x32x32xbf16> to vector<32x32xbf16>
    %c0_71 = arith.constant 0 : index
    %c5_72 = arith.constant 5 : index
    %c0_73 = arith.constant 0 : index
    %c0_74 = arith.constant 0 : index
    %117 = vector.load %arg6[%c0_71, %c5_72, %c0_73, %c0_74] : memref<1x8x1x32xf32, #tpu.memory_space<vmem>>, vector<1x1x1x32xf32>
    %118 = vector.shape_cast %117 : vector<1x1x1x32xf32> to vector<1x32xf32>
    %c0_75 = arith.constant 0 : index
    %c6 = arith.constant 6 : index
    %c0_76 = arith.constant 0 : index
    %c0_77 = arith.constant 0 : index
    %119 = vector.load %arg5[%c0_75, %c6, %c0_76, %c0_77] : memref<1x8x32x32xbf16, #tpu.memory_space<vmem>>, vector<1x1x32x32xbf16>
    %120 = vector.shape_cast %119 : vector<1x1x32x32xbf16> to vector<32x32xbf16>
    %c0_78 = arith.constant 0 : index
    %c6_79 = arith.constant 6 : index
    %c0_80 = arith.constant 0 : index
    %c0_81 = arith.constant 0 : index
    %121 = vector.load %arg6[%c0_78, %c6_79, %c0_80, %c0_81] : memref<1x8x1x32xf32, #tpu.memory_space<vmem>>, vector<1x1x1x32xf32>
    %122 = vector.shape_cast %121 : vector<1x1x1x32xf32> to vector<1x32xf32>
    %c0_82 = arith.constant 0 : index
    %c7 = arith.constant 7 : index
    %c0_83 = arith.constant 0 : index
    %c0_84 = arith.constant 0 : index
    %123 = vector.load %arg5[%c0_82, %c7, %c0_83, %c0_84] : memref<1x8x32x32xbf16, #tpu.memory_space<vmem>>, vector<1x1x32x32xbf16>
    %124 = vector.shape_cast %123 : vector<1x1x32x32xbf16> to vector<32x32xbf16>
    %c0_85 = arith.constant 0 : index
    %c7_86 = arith.constant 7 : index
    %c0_87 = arith.constant 0 : index
    %c0_88 = arith.constant 0 : index
    %125 = vector.load %arg6[%c0_85, %c7_86, %c0_87, %c0_88] : memref<1x8x1x32xf32, #tpu.memory_space<vmem>>, vector<1x1x1x32xf32>
    %126 = vector.shape_cast %125 : vector<1x1x1x32xf32> to vector<1x32xf32>
    %cst_89 = arith.constant dense<0.000000e+00> : vector<16x32xf32>
    %127 = tpu.matmul %110, %112, %cst_89 {dimension_numbers = #tpu.dot_dimension_numbers<[1], [0], [0], [1], [0, 0, 1, 1], [], []>} : vector<16x32xbf16>, vector<32x32xbf16>, vector<16x32xf32> -> vector<16x32xf32>
    %128 = vector.broadcast %114 : vector<1x32xf32> to vector<16x32xf32>
    %129 = arith.addf %127, %128 : vector<16x32xf32>
    %cst_90 = arith.constant dense<0.000000e+00> : vector<16x32xf32>
    %130 = tpu.matmul %5, %116, %cst_90 {dimension_numbers = #tpu.dot_dimension_numbers<[1], [0], [0], [1], [0, 0, 1, 1], [], []>} : vector<16x32xbf16>, vector<32x32xbf16>, vector<16x32xf32> -> vector<16x32xf32>
    %131 = vector.broadcast %118 : vector<1x32xf32> to vector<16x32xf32>
    %132 = arith.addf %130, %131 : vector<16x32xf32>
    %cst_91 = arith.constant dense<0.000000e+00> : vector<16x32xf32>
    %133 = tpu.matmul %5, %120, %cst_91 {dimension_numbers = #tpu.dot_dimension_numbers<[1], [0], [0], [1], [0, 0, 1, 1], [], []>} : vector<16x32xbf16>, vector<32x32xbf16>, vector<16x32xf32> -> vector<16x32xf32>
    %134 = vector.broadcast %122 : vector<1x32xf32> to vector<16x32xf32>
    %135 = arith.addf %133, %134 : vector<16x32xf32>
    %cst_92 = arith.constant 2.500000e-01 : f32
    %136 = vector.broadcast %cst_92 : f32 to vector<16x32xf32>
    %137 = arith.mulf %129, %136 : vector<16x32xf32>
    %138 = arith.truncf %137 : vector<16x32xf32> to vector<16x32xbf16>
    %139 = vector.shape_cast %138 : vector<16x32xbf16> to vector<2x8x32xbf16>
    %140 = arith.truncf %132 : vector<16x32xf32> to vector<16x32xbf16>
    %141 = vector.shape_cast %140 : vector<16x32xbf16> to vector<2x8x32xbf16>
    %142 = arith.truncf %135 : vector<16x32xf32> to vector<16x32xbf16>
    %143 = vector.shape_cast %142 : vector<16x32xbf16> to vector<2x8x32xbf16>
    %144 = vector.extract_strided_slice %139 {offsets = [0, 0, 0], sizes = [2, 8, 16], strides = [1, 1, 1]} : vector<2x8x32xbf16> to vector<2x8x16xbf16>
    %145 = vector.extract_strided_slice %141 {offsets = [0, 0, 0], sizes = [2, 8, 16], strides = [1, 1, 1]} : vector<2x8x32xbf16> to vector<2x8x16xbf16>
    %cst_93 = arith.constant dense<0.000000e+00> : vector<2x8x8xf32>
    %146 = tpu.matmul %144, %145, %cst_93 {dimension_numbers = #tpu.dot_dimension_numbers<[2], [2], [1], [1], [0, 0, 0, 1, 1, 1], [0], [0]>} : vector<2x8x16xbf16>, vector<2x8x16xbf16>, vector<2x8x8xf32> -> vector<2x8x8xf32>
    %cst_94 = arith.constant dense<0xFF800000> : vector<2x8xf32>
    %147 = vector.multi_reduction <maximumf>, %146, %cst_94 [2] : vector<2x8x8xf32> to vector<2x8xf32>
    %148 = vector.shape_cast %147 : vector<2x8xf32> to vector<2x8x1xf32>
    %149 = vector.broadcast %148 : vector<2x8x1xf32> to vector<2x8x8xf32>
    %150 = arith.subf %146, %149 : vector<2x8x8xf32>
    %151 = math.exp %150 : vector<2x8x8xf32>
    %cst_95 = arith.constant dense<0.000000e+00> : vector<2x8xf32>
    %152 = vector.multi_reduction <add>, %151, %cst_95 [2] : vector<2x8x8xf32> to vector<2x8xf32>
    %153 = vector.shape_cast %152 : vector<2x8xf32> to vector<2x8x1xf32>
    %154 = tpu.reciprocal %153 {approx = true} : vector<2x8x1xf32> -> vector<2x8x1xf32>
    %155 = vector.broadcast %154 : vector<2x8x1xf32> to vector<2x8x8xf32>
    %156 = arith.mulf %151, %155 : vector<2x8x8xf32>
    %157 = arith.truncf %156 : vector<2x8x8xf32> to vector<2x8x8xbf16>
    %158 = vector.extract_strided_slice %143 {offsets = [0, 0, 0], sizes = [2, 8, 16], strides = [1, 1, 1]} : vector<2x8x32xbf16> to vector<2x8x16xbf16>
    %cst_96 = arith.constant dense<0.000000e+00> : vector<2x8x16xf32>
    %159 = tpu.matmul %157, %158, %cst_96 {dimension_numbers = #tpu.dot_dimension_numbers<[2], [1], [1], [2], [0, 0, 0, 1, 1, 2], [0], [0]>} : vector<2x8x8xbf16>, vector<2x8x16xbf16>, vector<2x8x16xf32> -> vector<2x8x16xf32>
    %160 = vector.extract_strided_slice %139 {offsets = [0, 0, 16], sizes = [2, 8, 16], strides = [1, 1, 1]} : vector<2x8x32xbf16> to vector<2x8x16xbf16>
    %161 = vector.extract_strided_slice %141 {offsets = [0, 0, 16], sizes = [2, 8, 16], strides = [1, 1, 1]} : vector<2x8x32xbf16> to vector<2x8x16xbf16>
    %cst_97 = arith.constant dense<0.000000e+00> : vector<2x8x8xf32>
    %162 = tpu.matmul %160, %161, %cst_97 {dimension_numbers = #tpu.dot_dimension_numbers<[2], [2], [1], [1], [0, 0, 0, 1, 1, 1], [0], [0]>} : vector<2x8x16xbf16>, vector<2x8x16xbf16>, vector<2x8x8xf32> -> vector<2x8x8xf32>
    %cst_98 = arith.constant dense<0xFF800000> : vector<2x8xf32>
    %163 = vector.multi_reduction <maximumf>, %162, %cst_98 [2] : vector<2x8x8xf32> to vector<2x8xf32>
    %164 = vector.shape_cast %163 : vector<2x8xf32> to vector<2x8x1xf32>
    %165 = vector.broadcast %164 : vector<2x8x1xf32> to vector<2x8x8xf32>
    %166 = arith.subf %162, %165 : vector<2x8x8xf32>
    %167 = math.exp %166 : vector<2x8x8xf32>
    %cst_99 = arith.constant dense<0.000000e+00> : vector<2x8xf32>
    %168 = vector.multi_reduction <add>, %167, %cst_99 [2] : vector<2x8x8xf32> to vector<2x8xf32>
    %169 = vector.shape_cast %168 : vector<2x8xf32> to vector<2x8x1xf32>
    %170 = tpu.reciprocal %169 {approx = true} : vector<2x8x1xf32> -> vector<2x8x1xf32>
    %171 = vector.broadcast %170 : vector<2x8x1xf32> to vector<2x8x8xf32>
    %172 = arith.mulf %167, %171 : vector<2x8x8xf32>
    %173 = arith.truncf %172 : vector<2x8x8xf32> to vector<2x8x8xbf16>
    %174 = vector.extract_strided_slice %143 {offsets = [0, 0, 16], sizes = [2, 8, 16], strides = [1, 1, 1]} : vector<2x8x32xbf16> to vector<2x8x16xbf16>
    %cst_100 = arith.constant dense<0.000000e+00> : vector<2x8x16xf32>
    %175 = tpu.matmul %173, %174, %cst_100 {dimension_numbers = #tpu.dot_dimension_numbers<[2], [1], [1], [2], [0, 0, 0, 1, 1, 2], [0], [0]>} : vector<2x8x8xbf16>, vector<2x8x16xbf16>, vector<2x8x16xf32> -> vector<2x8x16xf32>
    %176 = tpu.concatenate %159, %175 in 2 : vector<2x8x16xf32>, vector<2x8x16xf32> -> vector<2x8x32xf32>
    %177 = vector.shape_cast %176 : vector<2x8x32xf32> to vector<16x32xf32>
    %178 = arith.truncf %177 : vector<16x32xf32> to vector<16x32xbf16>
    %cst_101 = arith.constant dense<0.000000e+00> : vector<16x32xf32>
    %179 = tpu.matmul %178, %124, %cst_101 {dimension_numbers = #tpu.dot_dimension_numbers<[1], [0], [0], [1], [0, 0, 1, 1], [], []>} : vector<16x32xbf16>, vector<32x32xbf16>, vector<16x32xf32> -> vector<16x32xf32>
    %180 = vector.broadcast %126 : vector<1x32xf32> to vector<16x32xf32>
    %181 = arith.addf %179, %180 : vector<16x32xf32>
    %182 = arith.addf %109, %181 : vector<16x32xf32>
    %c0_102 = arith.constant 0 : index
    %c1_103 = arith.constant 1 : index
    %c0_104 = arith.constant 0 : index
    %c0_105 = arith.constant 0 : index
    %183 = vector.load %arg11[%c0_102, %c1_103, %c0_104, %c0_105] : memref<1x3x1x32xf32, #tpu.memory_space<vmem>>, vector<1x1x1x32xf32>
    %184 = vector.shape_cast %183 : vector<1x1x1x32xf32> to vector<1x32xf32>
    %c0_106 = arith.constant 0 : index
    %c1_107 = arith.constant 1 : index
    %c0_108 = arith.constant 0 : index
    %c0_109 = arith.constant 0 : index
    %185 = vector.load %arg12[%c0_106, %c1_107, %c0_108, %c0_109] : memref<1x3x1x32xf32, #tpu.memory_space<vmem>>, vector<1x1x1x32xf32>
    %186 = vector.shape_cast %185 : vector<1x1x1x32xf32> to vector<1x32xf32>
    %cst_110 = arith.constant dense<0.000000e+00> : vector<16xf32>
    %187 = vector.multi_reduction <add>, %182, %cst_110 [1] : vector<16x32xf32> to vector<16xf32>
    %188 = vector.shape_cast %187 : vector<16xf32> to vector<16x1xf32>
    %cst_111 = arith.constant 3.200000e+01 : f32
    %189 = vector.broadcast %cst_111 : f32 to vector<16x1xf32>
    %190 = arith.divf %188, %189 : vector<16x1xf32>
    %191 = vector.broadcast %190 : vector<16x1xf32> to vector<16x32xf32>
    %192 = arith.subf %182, %191 : vector<16x32xf32>
    %193 = arith.mulf %192, %192 : vector<16x32xf32>
    %cst_112 = arith.constant dense<0.000000e+00> : vector<16xf32>
    %194 = vector.multi_reduction <add>, %193, %cst_112 [1] : vector<16x32xf32> to vector<16xf32>
    %195 = vector.shape_cast %194 : vector<16xf32> to vector<16x1xf32>
    %cst_113 = arith.constant 3.200000e+01 : f32
    %196 = vector.broadcast %cst_113 : f32 to vector<16x1xf32>
    %197 = arith.divf %195, %196 : vector<16x1xf32>
    %cst_114 = arith.constant 9.99999974E-6 : f32
    %198 = vector.broadcast %cst_114 : f32 to vector<16x1xf32>
    %199 = arith.addf %197, %198 : vector<16x1xf32>
    %200 = math.rsqrt %199 : vector<16x1xf32>
    %201 = vector.broadcast %200 : vector<16x1xf32> to vector<16x32xf32>
    %202 = arith.mulf %192, %201 : vector<16x32xf32>
    %203 = vector.broadcast %184 : vector<1x32xf32> to vector<16x32xf32>
    %204 = arith.mulf %202, %203 : vector<16x32xf32>
    %205 = vector.broadcast %186 : vector<1x32xf32> to vector<16x32xf32>
    %206 = arith.addf %204, %205 : vector<16x32xf32>
    %207 = arith.truncf %206 : vector<16x32xf32> to vector<16x32xbf16>
    %cst_115 = arith.constant 0.000000e+00 : f32
    %208 = vector.broadcast %cst_115 : f32 to vector<16x32xf32>
    %c0_116 = arith.constant 0 : index
    %c0_117 = arith.constant 0 : index
    %c0_118 = arith.constant 0 : index
    %209 = vector.load %arg7[%c0_116, %c0_117, %c0_118] : memref<1x32x64xbf16, #tpu.memory_space<vmem>>, vector<1x32x64xbf16>
    %210 = vector.shape_cast %209 : vector<1x32x64xbf16> to vector<32x64xbf16>
    %cst_119 = arith.constant dense<0.000000e+00> : vector<16x64xf32>
    %211 = tpu.matmul %207, %210, %cst_119 {dimension_numbers = #tpu.dot_dimension_numbers<[1], [0], [0], [1], [0, 0, 1, 1], [], []>} : vector<16x32xbf16>, vector<32x64xbf16>, vector<16x64xf32> -> vector<16x64xf32>
    %c0_120 = arith.constant 0 : index
    %c0_121 = arith.constant 0 : index
    %c0_122 = arith.constant 0 : index
    %212 = vector.load %arg8[%c0_120, %c0_121, %c0_122] : memref<1x1x64xf32, #tpu.memory_space<vmem>>, vector<1x1x64xf32>
    %213 = vector.shape_cast %212 : vector<1x1x64xf32> to vector<1x64xf32>
    %214 = vector.broadcast %213 : vector<1x64xf32> to vector<16x64xf32>
    %215 = arith.addf %211, %214 : vector<16x64xf32>
    %cst_123 = arith.constant 0.000000e+00 : f32
    %216 = vector.broadcast %cst_123 : f32 to vector<16x64xf32>
    %217 = arith.maximumf %215, %216 : vector<16x64xf32>
    %218 = arith.truncf %217 : vector<16x64xf32> to vector<16x64xbf16>
    %c0_124 = arith.constant 0 : index
    %c0_125 = arith.constant 0 : index
    %c0_126 = arith.constant 0 : index
    %219 = vector.load %arg9[%c0_124, %c0_125, %c0_126] : memref<1x64x32xbf16, #tpu.memory_space<vmem>>, vector<1x64x32xbf16>
    %220 = vector.shape_cast %219 : vector<1x64x32xbf16> to vector<64x32xbf16>
    %cst_127 = arith.constant dense<0.000000e+00> : vector<16x32xf32>
    %221 = tpu.matmul %218, %220, %cst_127 {dimension_numbers = #tpu.dot_dimension_numbers<[1], [0], [0], [1], [0, 0, 1, 1], [], []>} : vector<16x64xbf16>, vector<64x32xbf16>, vector<16x32xf32> -> vector<16x32xf32>
    %222 = arith.addf %208, %221 : vector<16x32xf32>
    %223 = arith.addf %206, %222 : vector<16x32xf32>
    %c0_128 = arith.constant 0 : index
    %c0_129 = arith.constant 0 : index
    %c0_130 = arith.constant 0 : index
    %224 = vector.load %arg10[%c0_128, %c0_129, %c0_130] : memref<1x1x32xf32, #tpu.memory_space<vmem>>, vector<1x1x32xf32>
    %225 = vector.shape_cast %224 : vector<1x1x32xf32> to vector<1x32xf32>
    %226 = vector.broadcast %225 : vector<1x32xf32> to vector<16x32xf32>
    %227 = arith.addf %223, %226 : vector<16x32xf32>
    %c0_131 = arith.constant 0 : index
    %c2_132 = arith.constant 2 : index
    %c0_133 = arith.constant 0 : index
    %c0_134 = arith.constant 0 : index
    %228 = vector.load %arg11[%c0_131, %c2_132, %c0_133, %c0_134] : memref<1x3x1x32xf32, #tpu.memory_space<vmem>>, vector<1x1x1x32xf32>
    %229 = vector.shape_cast %228 : vector<1x1x1x32xf32> to vector<1x32xf32>
    %c0_135 = arith.constant 0 : index
    %c2_136 = arith.constant 2 : index
    %c0_137 = arith.constant 0 : index
    %c0_138 = arith.constant 0 : index
    %230 = vector.load %arg12[%c0_135, %c2_136, %c0_137, %c0_138] : memref<1x3x1x32xf32, #tpu.memory_space<vmem>>, vector<1x1x1x32xf32>
    %231 = vector.shape_cast %230 : vector<1x1x1x32xf32> to vector<1x32xf32>
    %cst_139 = arith.constant dense<0.000000e+00> : vector<16xf32>
    %232 = vector.multi_reduction <add>, %227, %cst_139 [1] : vector<16x32xf32> to vector<16xf32>
    %233 = vector.shape_cast %232 : vector<16xf32> to vector<16x1xf32>
    %cst_140 = arith.constant 3.200000e+01 : f32
    %234 = vector.broadcast %cst_140 : f32 to vector<16x1xf32>
    %235 = arith.divf %233, %234 : vector<16x1xf32>
    %236 = vector.broadcast %235 : vector<16x1xf32> to vector<16x32xf32>
    %237 = arith.subf %227, %236 : vector<16x32xf32>
    %238 = arith.mulf %237, %237 : vector<16x32xf32>
    %cst_141 = arith.constant dense<0.000000e+00> : vector<16xf32>
    %239 = vector.multi_reduction <add>, %238, %cst_141 [1] : vector<16x32xf32> to vector<16xf32>
    %240 = vector.shape_cast %239 : vector<16xf32> to vector<16x1xf32>
    %cst_142 = arith.constant 3.200000e+01 : f32
    %241 = vector.broadcast %cst_142 : f32 to vector<16x1xf32>
    %242 = arith.divf %240, %241 : vector<16x1xf32>
    %cst_143 = arith.constant 9.99999974E-6 : f32
    %243 = vector.broadcast %cst_143 : f32 to vector<16x1xf32>
    %244 = arith.addf %242, %243 : vector<16x1xf32>
    %245 = math.rsqrt %244 : vector<16x1xf32>
    %246 = vector.broadcast %245 : vector<16x1xf32> to vector<16x32xf32>
    %247 = arith.mulf %237, %246 : vector<16x32xf32>
    %248 = vector.broadcast %229 : vector<1x32xf32> to vector<16x32xf32>
    %249 = arith.mulf %247, %248 : vector<16x32xf32>
    %250 = vector.broadcast %231 : vector<1x32xf32> to vector<16x32xf32>
    %251 = arith.addf %249, %250 : vector<16x32xf32>
    %c0_144 = arith.constant 0 : index
    %c0_145 = arith.constant 0 : index
    %252 = vector.load %arg14[%c0_144, %c0_145] : memref<16x32xf32, #tpu.memory_space<vmem>>, vector<16x32xf32>
    tpu.vector_store %arg14[%c0_144, %c0_145], %251 {strides = array<i32>} : memref<16x32xf32, #tpu.memory_space<vmem>>, vector<16x32xf32>,
    %c1_i32 = arith.constant 1 : i32
    %253 = arith.cmpi eq, %arg1, %c1_i32 : i32
    %254 = arith.extui %253 : i1 to i32
    %c0_i32_146 = arith.constant 0 : i32
    %255 = arith.cmpi ne, %254, %c0_i32_146 : i32
    scf.if %255 {
      %256 = vector.shape_cast %251 : vector<16x32xf32> to vector<2x8x32xf32>
      %c0_147 = arith.constant 0 : index
      %c0_148 = arith.constant 0 : index
      %c0_149 = arith.constant 0 : index
      %257 = vector.load %arg13[%c0_147, %c0_148, %c0_149] : memref<2x8x32xf32, #tpu.memory_space<vmem>>, vector<2x8x32xf32>
      tpu.vector_store %arg13[%c0_147, %c0_148, %c0_149], %256 {strides = array<i32>} : memref<2x8x32xf32, #tpu.memory_space<vmem>>, vector<2x8x32xf32>,
    } else {
    }
    return
  }
  func.func @transform_0(%arg0: i32, %arg1: i32) -> (i32, i32, i32) {
    %c0_i32 = arith.constant 0 : i32
    %c0_i32_0 = arith.constant 0 : i32
    %c0_i32_1 = arith.constant 0 : i32
    return %arg0, %c0_i32, %c0_i32_0 : i32, i32, i32
  }
  func.func @transform_1(%arg0: i32, %arg1: i32) -> (i32, i32, i32) {
    %c0_i32 = arith.constant 0 : i32
    %c0_i32_0 = arith.constant 0 : i32
    %c0_i32_1 = arith.constant 0 : i32
    return %arg0, %c0_i32, %c0_i32_0 : i32, i32, i32
  }
  func.func @transform_2(%arg0: i32, %arg1: i32) -> (i32, i32) {
    %c0_i32 = arith.constant 0 : i32
    %c0_i32_0 = arith.constant 0 : i32
    %c0_i32_1 = arith.constant 0 : i32
    return %c0_i32, %c0_i32_0 : i32, i32
  }
  func.func @transform_3(%arg0: i32, %arg1: i32) -> (i32, i32, i32, i32) {
    %c0_i32 = arith.constant 0 : i32
    %c0_i32_0 = arith.constant 0 : i32
    %c0_i32_1 = arith.constant 0 : i32
    %c0_i32_2 = arith.constant 0 : i32
    return %arg1, %c0_i32, %c0_i32_0, %c0_i32_1 : i32, i32, i32, i32
  }
  func.func @transform_4(%arg0: i32, %arg1: i32) -> (i32, i32, i32, i32) {
    %c0_i32 = arith.constant 0 : i32
    %c0_i32_0 = arith.constant 0 : i32
    %c0_i32_1 = arith.constant 0 : i32
    %c0_i32_2 = arith.constant 0 : i32
    return %arg1, %c0_i32, %c0_i32_0, %c0_i32_1 : i32, i32, i32, i32
  }
  func.func @transform_5(%arg0: i32, %arg1: i32) -> (i32, i32, i32) {
    %c0_i32 = arith.constant 0 : i32
    %c0_i32_0 = arith.constant 0 : i32
    %c0_i32_1 = arith.constant 0 : i32
    return %arg1, %c0_i32, %c0_i32_0 : i32, i32, i32
  }
  func.func @transform_6(%arg0: i32, %arg1: i32) -> (i32, i32, i32) {
    %c0_i32 = arith.constant 0 : i32
    %c0_i32_0 = arith.constant 0 : i32
    %c0_i32_1 = arith.constant 0 : i32
    return %arg1, %c0_i32, %c0_i32_0 : i32, i32, i32
  }
  func.func @transform_7(%arg0: i32, %arg1: i32) -> (i32, i32, i32) {
    %c0_i32 = arith.constant 0 : i32
    %c0_i32_0 = arith.constant 0 : i32
    %c0_i32_1 = arith.constant 0 : i32
    return %arg1, %c0_i32, %c0_i32_0 : i32, i32, i32
  }
  func.func @transform_8(%arg0: i32, %arg1: i32) -> (i32, i32, i32) {
    %c0_i32 = arith.constant 0 : i32
    %c0_i32_0 = arith.constant 0 : i32
    %c0_i32_1 = arith.constant 0 : i32
    return %arg1, %c0_i32, %c0_i32_0 : i32, i32, i32
  }
  func.func @transform_9(%arg0: i32, %arg1: i32) -> (i32, i32, i32, i32) {
    %c0_i32 = arith.constant 0 : i32
    %c0_i32_0 = arith.constant 0 : i32
    %c0_i32_1 = arith.constant 0 : i32
    %c0_i32_2 = arith.constant 0 : i32
    return %arg1, %c0_i32, %c0_i32_0, %c0_i32_1 : i32, i32, i32, i32
  }
  func.func @transform_10(%arg0: i32, %arg1: i32) -> (i32, i32, i32, i32) {
    %c0_i32 = arith.constant 0 : i32
    %c0_i32_0 = arith.constant 0 : i32
    %c0_i32_1 = arith.constant 0 : i32
    %c0_i32_2 = arith.constant 0 : i32
    return %arg1, %c0_i32, %c0_i32_0, %c0_i32_1 : i32, i32, i32, i32
  }
  func.func @transform_11(%arg0: i32, %arg1: i32) -> (i32, i32, i32) {
    %c0_i32 = arith.constant 0 : i32
    %c0_i32_0 = arith.constant 0 : i32
    %c0_i32_1 = arith.constant 0 : i32
    return %arg0, %c0_i32, %c0_i32_0 : i32, i32, i32
  }
}

</mosaic_0001>

<bundles_post_ra>
// kernel: tpu_custom_call.1
= control target key start
LH: loop header
LB: loop body
LE: loop exit
PB: predicated region body
PF: predicated region fallthrough
CT: control target
= control target key end

     0   :  { %s3718_s0 = inlined_call_operand.vmem [shape: f32[2,8,32], index: 0, kind: input, shape index: {}]   ;;  %s3719_s1 = inlined_call_operand.vmem [shape: bf16[2,8,32], index: 1, kind: input, shape index: {}]   ;;  %s3720_s2 = inlined_call_operand.vmem [shape: f32[8,8], index: 2, kind: input, shape index: {}]   ;;  %s3721_s3 = inlined_call_operand.hbm [shape: bf16[2,8,32,32], index: 3, kind: input, shape index: {}]   ;;  %s3722_s4 = inlined_call_operand.vmem [shape: f32[2,8,1,32], index: 4, kind: input, shape index: {}]   ;;  %s3723_s5 = inlined_call_operand.vmem [shape: bf16[2,32,64], index: 5, kind: input, shape index: {}]   ;;  %s3724_s6 = inlined_call_operand.vmem [shape: f32[2,1,64], index: 6, kind: input, shape index: {}]   ;;  %s3725_s7 = inlined_call_operand.vmem [shape: bf16[2,64,32], index: 7, kind: input, shape index: {}]   ;;  %s3726_s8 = inlined_call_operand.vmem [shape: f32[2,1,32], index: 8, kind: input, shape index: {}]   ;;  %s3727_s9 = inlined_call_operand.vmem [shape: f32[2,3,1,32], index: 9, kind: input, shape index: {}]   ;;  %s3728_s10 = inlined_call_operand.vmem [shape: f32[2,3,1,32], index: 10, kind: input, shape index: {}]   ;;  %s3729_s11 = inlined_call_operand.hbm [shape: f32[2,8,32], index: 11, kind: output, shape index: {}]  }
   0x1   :  { %3735 = sst [smem:[#allocation14_spill]] %s3721_s3 }
   0x2   :  { %3736 = sst [smem:[#allocation15_spill]] %s3722_s4 }
   0x3   :  { %3737 = sst [smem:[#allocation16_spill]] %s3729_s11 }
   0x4   :  { %16 = vsyncpa [#allocation4], 0 }
   0x5   :  { %18 = vsyncpa [#allocation4 + $0x1], 0 }
   0x6   :  { %19 = vsyncpa [#allocation5], 0  ;;  %s3270_s17 = smov 0   ;;  %s3272_s18 = smov 0  }
   0x7   :  { %s3274_s19 = smov 0   ;;  %s3276_s20 = smov 0  }
   0x8   :  { %s3278_s21 = smov 0   ;;  %s3280_s22 = smov 0  }
   0x9 LB: > { %3738 = sst [smem:[#allocation9_spill]] %s3182_s18  ;;  %s3730_s23 = sadd.s32 4294967295, %s3198_s22   ;;  %s3198_s22 = sphi %s3280_s22, %s25_s22   ;;  %s3194_s21 = sphi %s3278_s21, %s3755_s21   ;;  %s3190_s20 = sphi %s3276_s20, %s3754_s20   ;;  %s3186_s19 = sphi %s3274_s19, %s3753_s19   ;;  %s3182_s18 = sphi %s3272_s18, %s3752_s18   ;;  %s3178_s17 = sphi %s3270_s17, %s3751_s17  }
   0xa   : > { %3739 = sst [smem:[#allocation10_spill]] %s3186_s19  ;;  %s34_s24 = sadd.s32 1, %s3194_s21 }
   0xb   : > { %3740 = sst [smem:[#allocation11_spill]] %s3194_s21  ;;  %p35_p0 = scmp.ge.s32.totalorder %s34_s24, 2 }
   0xc   : > { %s117_s25 = sadd.s32 1, %s3186_s19  ;;  %p124_p1 = scmp.ne.s32.totalorder %s3186_s19, %s3182_s18 }
   0xd   : > { %p125_p2 = scmp.eq.s32.totalorder %s3198_s22, 0  ;;  %s3757_s24 = smov (%p35_p0, %s34_s24), 0 }
   0xe   : > { %3741 = sst [smem:[#allocation12_spill]] %s3757_s24  ;;  %p130_p4 = scmp.ne.s32.totalorder %s3182_s18, %s3178_s17 }
   0xf   : > { %p3306_p3 = por %p125_p2, %p124_p1  ;;  %s114_s27 = ssub.s32 %s3194_s21, %s3757_s24 }
  0x10   : > { %p131_p5 = scmp.eq.s32.totalorder %s3730_s23, 0  ;;  %p115_p6 = scmp.eq.s32.totalorder %s114_s27, 0 }
  0x11   : > { %p2955_p8 = scmp.lt.s32.totalorder %s3198_s22, 2  ;;  %s383_s30 = sand.u32 1, %s3186_s19  }
  0x12   : > { %p3315_p7 = por %p131_p5, %p130_p4  ;;  %s2685_s12 = sshll.u32 %s3194_s21, 11 }
  0x13   : > { %s3321_s29 = scalar_select %p115_p6, %s3186_s19, %s117_s25  }
  0x14   : > { %s2553_s13 = sshll.u32 %s383_s30, 7  ;;  %s3745_s3 = sld [smem:[#allocation14_spill]] }
  0x15   : > { %3744 = sst [smem:[#allocation13_spill]] %s3321_s29  ;;  %s387_s11 = scalar_lea.vmem [#allocation3], %s2553_s13 }
  0x16   : > { %s394_s17 = sshll.u32 %s387_s11, 4  ;;  %p3330_p9 = pnand %p2955_p8, %p3306_p3  ;;  %s395_s17 = int_to_ptr.vmem [resolvable:$true] %s394_s17 }
  0x17   : > { %s384_s27 = scalar_lea.sflag [#allocation4], %s383_s30  ;;  %s3105_s25 = scalar_lea.vmem %s395_s17, 2048 }
  0x18   : > { %p3094_p10 = pneg %p3330_p9  ;;  %p3106_p11 = scmp.ne.s32.totalorder %s395_s17, %s3105_s25 }
  0x19   : > { %s3200_s24 = smov [#allocation3]  }
  0x1a   : > { %s393_s16 = scalar_lea.hbm %s3745_s3, %s2685_s12  ;;  %p3108_p12 = pnand %p3106_p11, %p3094_p10 }
  0x1b   : > { %s3110_s21 = sshll.u32 %s3200_s24, 4  ;;  %s3111_s21 = int_to_ptr.vmem [resolvable:$false] %s3110_s21 }
  0x1c   : > { %p3109_p13 = pneg %p3108_p12  ;;  %s3112_s12 = scalar_lea.vmem %s3111_s21, 4096 }
  0x1d   : > { %p3113_p0 = scmp.lt.s32.totalorder %s395_s17, %s3111_s21  ;;  %p3114_p1 = scmp.lt.s32.totalorder %s3112_s12, %s3105_s25 }
  0x1f   : > { %p3115_p2 = por %p3114_p1, %p3113_p0 }
  0x21   : > { %p3116_p3 = pnand %p3115_p2, %p3109_p13 }
  0x23   : > { %3119 = shalt.err (!%p3116_p3)
}
  0x24   : > { %s3201_s11 = smov 64   ;;  %s3202_s26 = smov 4  }
  0x25   : > { %2954 = dma.hbm_to_vmem [thread:$0]  (!%p3330_p9), %s393_s16, 2048, %s395_s17, %s384_s27, %s3201_s11, %s3201_s11, %s3202_s26  }
  0x26   : > { %p2556_p4 = scmp.ge.s32.totalorder %s3198_s22, 1  ;;  %p451_p5 = scmp.lt.s32.totalorder %s3198_s22, 3 }
  0x28   : > { %p452_p6 = pnand %p2556_p4, %p451_p5 }
  0x29   : > { %s457_s24 = sand.u32 (!%p452_p6), 1, %s3182_s18  }
  0x2a   : > { %455 = sbr.rel (%p452_p6) target bundleno = 4921 (0x1339), region = 64  ;;  %s2557_s30 = sshll.u32 (!%p452_p6), %s457_s24, 7 }
  0x2b   : > { %s458_s21 = scalar_lea.sflag (!%p452_p6), [#allocation4], %s457_s24  ;;  %s3341_s13 = scalar_lea.vmem (!%p452_p6), [#allocation3], %s2557_s30 }
  0x2f   : > { %3169 = dma.done.wait (%p3315_p7), %s458_s21, 2048  }
  0x30   : > { %3171 = vsyncadd (%p3315_p7), %s458_s21, 4294965248  ;;  %p545_p8 = scmp.lt.s32.totalorder %s3190_s20, 1  ;;  %s3747_s4 = sld [smem:[#allocation15_spill]] }
  0x31   : > { %p2563_p7 = scmp.ne.s32.totalorder %s3190_s20, 0 }
  0x32   : > { %s3349_s23 = scalar_select %p545_p8, %s3190_s20, 1 }
  0x34   : > { %s2558_s14 = sshll.u32 %s3349_s23, 3  ;;  %s2686_s15 = sshll.u32 %s3349_s23, 4 }
  0x35   : > { %s3361_s12 = scalar_lea.vmem %s3723_s5, %s2686_s15  ;;  %s556_s24 = scalar_lea.vmem %s3724_s6, %s3349_s23 }
  0x36   : > { %s3356_s27 = scalar_lea.vmem %s3747_s4, %s2558_s14  ;;  %s2687_s30 = sshll.u32 %s3349_s23, 5 }
  0x37   : > { %s3371_s29 = scalar_lea.vmem %s3725_s7, %s2687_s30  ;;  %s564_s14 = scalar_lea.vmem %s3726_s8, %s3349_s23 }
  0x38   : > { %s2944_s16 = smul.u32 3, %s3349_s23 }
  0x39   : > { %578 = sbr.rel (%p2563_p7) target bundleno = 64 (0x40), region = 72 }
  0x3a   : > { %s3381_s15 = scalar_lea.vmem %s3727_s9, %s2944_s16  ;;  %s3386_s11 = scalar_lea.vmem %s3728_s10, %s2944_s16 }
  0x3e   : > { %v579_v0 = vld [vmem:[%s3718_s0] sm:$0xff]  ;;  %vm581_vm0 = vcmask 261120   ;;  %v580_v1 = vld [vmem:[%s3718_s0 + $0x8] sm:$0xff] }
  0x3f   : > { %582 = vst.msk [vmem:[#allocation2] sm:$0xff] %vm581_vm0, %v579_v0  ;;  %583 = vst.msk [vmem:[#allocation2 + $0x8] sm:$0xff] %vm581_vm0, %v580_v1 }
  0x40 PF: > { %v3025_v2 = vld [vmem:[%s3341_s13 + $0x18] sm:$0xff]   ;;  %v3203_v3 = vmov 0.0   ;;  %v3026_v4 = vld [vmem:[%s3341_s13 + $0x8] sm:$0xff]   ;;  %v3027_v5 = vld [vmem:[%s3341_s13 + $0x10] sm:$0xff]   ;;  %vm3204_vm1 = vmmov 0   ;;  %vm634_vm2 = vcmask 261120  }
  0x41   : > { %2772 = vmatprep.subr.bf16.mxu1 %v3203_v3  ;;  %2764 = vmatprep.subr.bf16.mxu0 %v3203_v3  ;;  %v3028_v6 = vld [vmem:[%s3341_s13] sm:$0xff]   ;;  %v3029_v10 = vld [vmem:[%s3341_s13 + $0x28] sm:$0xff]   ;;  %v2583_v12 = vld [vmem:[%s3356_s27 + $0x1] ss:$0 sm:$0xff]  ;;  %vm817_vm3 = vcmask 130048   ;;  %s3205_s4 = smov 112  }
  0x42   : > { %2773 = vmatpush3.bf16.msra.mxu1 %v3025_v2  ;;  %2776 = vmatprep.mubr.msk.bf16.mxu1 %vm3204_vm1, %v3203_v3  ;;  %v3030_v11 = vld [vmem:[%s3341_s13 + $0x20] sm:$0xff]   ;;  %v2579_v13 = vld [vmem:[%s3356_s27] ss:$0 sm:$0xff]  ;;  %v2587_v34 = vld [vmem:[%s3356_s27 + $0x2] ss:$0 sm:$0xff]  ;;  %vm938_vm4 = vcmask 1043456  }
  0x43   : > { %2765 = vmatpush3.bf16.msra.mxu0 %v3026_v4  ;;  %2774 = vmatprep.subr.bf16.mxu1 %v3203_v3  ;;  %v3455_v45 = vld [vmem:[%s3720_s2] sm:$0xff]  ;;  %vm910_vm5 = vcmask 64512   ;;  %s3206_s16 = smov 16   ;;  %vm2257_vm6 = vcmask 523264   ;;  %p2680_p9 = scmp.ne.s32.totalorder %s3190_s20, 1 }
  0x44   : > { %2766 = vmatprep.subr.bf16.mxu0 %v3203_v3  ;;  %2768 = vmatprep.mubr.msk.bf16.mxu0 %vm3204_vm1, %v3203_v3 }
  0x46   : > { %v3407_v7 = vld [vmem:[#allocation2] sm:$0xff]  ;;  %v3409_v8 = vld [vmem:[#allocation2 + $0x8] sm:$0xff]  ;;  %2775 = vmatpush3.bf16.msra.mxu1 %v3027_v5 }
  0x47   : > { %v589_v9 = vpack.c.bf16 %v3409_v8, %v3407_v7  ;;  %2767 = vmatpush3.bf16.msra.mxu0 %v3028_v6  ;;  %2788 = vmatprep.subr.bf16.mxu1 %v3203_v3 }
  0x48   : > { %2780 = vmatprep.subr.bf16.mxu0 %v3203_v3 }
  0x49   : > { %2777 = vmatmul.mubr.msk.bf16.vlgmr.msra.gmra.mxu1 %vm634_vm2, %v589_v9 }
  0x4a   : > { %2769 = vmatmul.mubr.msk.bf16.vlgmr.msra.gmra.mxu0 %vm634_vm2, %v589_v9  ;;  %2790 = vmatprep.mubr.msk.bf16.mxu1 %vm3204_vm1, %v3203_v3 }
  0x4b   : > { %2781 = vmatpush3.bf16.msra.mxu0 %v3029_v10  ;;  %2784 = vmatprep.mubr.msk.bf16.mxu0 %vm3204_vm1, %v3203_v3 }
  0x4c   : > { %2782 = vmatprep.subr.bf16.mxu0 %v3203_v3 }
  0x4f   : > { %2783 = vmatpush3.bf16.msra.mxu0 %v3030_v11 }
  0x50   : > { %2794 = vmatprep.subr.bf16.mxu0 %v3203_v3 }
  0x52   : > { %2785 = vmatmul.mubr.msk.bf16.vlgmr.msra.gmra.mxu0 %vm634_vm2, %v589_v9 }
  0x53   : > { %2796 = vmatprep.mubr.msk.bf16.mxu0 %vm3204_vm1, %v3203_v3 }
 0x109   : > { %v731_v14 = vpop.f32.mrf.mxu1 }
 0x10a   : > { %v732_v15 = vadd.f32 %v2583_v12, %v731_v14  ;;  %v672_v16 = vpop.f32.mrf.mxu0 }
 0x10b   : > { %v673_v17 = vadd.f32 %v2579_v13, %v672_v16  ;;  %v2778_v18 = vpop.f32.mrf.mxu1 }
 0x10c   : > { %v2690_v19 = vpack.c.bf16 %v732_v15, %v732_v15  ;;  %v2770_v20 = vpop.f32.mrf.mxu0 }
 0x10d   : > { %v734_v21 = vpop.f32.mrf.mxu1  ;;  %v797_v23 = vmul.f32 0.25, %v673_v17 }
 0x10e   : > { %v822_v22 = vsel %vm817_vm3, %v2690_v19, 0  ;;  %v735_v24 = vadd.f32 %v2583_v12, %v734_v21  ;;  %v675_v25 = vpop.f32.mrf.mxu0 }
 0x10f   : > { %v2779_v26 = vpop.f32.mrf.mxu1  ;;  %2789 = vmatpush3.bf16.xpose.msra.mxu1 %v822_v22  ;;  %v676_v28 = vadd.f32 %v2579_v13, %v675_v25  ;;  %v2688_v30 = vpack.c.bf16 %v797_v23, %v797_v23 }
 0x110   : > { %v2691_v27 = vpack.c.bf16 %v735_v24, %v735_v24  ;;  %v2771_v29 = vpop.f32.mrf.mxu0  ;;  %2800 = vmatprep.subr.bf16.mxu1 %v3203_v3 }
 0x111   : > { %v798_v32 = vmul.f32 0.25, %v676_v28 }
 0x112   : > { %v868_v31 = vsel %vm817_vm3, %v2691_v27, 0  ;;  %1080 = vrot.lane.b32.xlu1 %v2691_v27, %s3205_s4  ;;  %v790_v35 = vpop.f32.mrf.mxu0 }
 0x113   : > { %2795 = vmatpush3.bf16.xpose.msra.mxu0 %v868_v31  ;;  %v2689_v33 = vpack.c.bf16 %v798_v32, %v798_v32  ;;  %v791_v36 = vadd.f32 %v2587_v34, %v790_v35 }
 0x114   : > { %2806 = vmatprep.subr.bf16.mxu0 %v3203_v3  ;;  %v2786_v37 = vpop.f32.mrf.mxu0 }
 0x115   : > { %v3442_v38 = vpack.c.bf16 %v791_v36, %v791_v36 }
 0x116   : > { %2791 = vmatmul.mubr.msk.bf16.vlgmr.msra.gmra.mxu1 %vm817_vm3, %v2688_v30  ;;  %v793_v39 = vpop.f32.mrf.mxu0 }
 0x117   : > { %2802 = vmatprep.mubr.msk.bf16.mxu1 %vm3204_vm1, %v3203_v3  ;;  %v940_v40 = vsel %vm938_vm4, %v3442_v38, 0  ;;  %v794_v41 = vadd.f32 %v2587_v34, %v793_v39 }
 0x118   : > { %v2787_v42 = vpop.f32.mrf.mxu0  ;;  %2801 = vmatpush3.bf16.msra.mxu1 %v940_v40 }
 0x119   : > { %v3446_v43 = vpack.c.bf16 %v794_v41, %v794_v41  ;;  %2812 = vmatprep.subr.bf16.mxu1 %v3203_v3 }
 0x11a   : > { %2797 = vmatmul.mubr.msk.bf16.vlgmr.msra.gmra.mxu0 %vm817_vm3, %v2689_v33 }
 0x11b   : > { %2808 = vmatprep.mubr.msk.bf16.mxu0 %vm3204_vm1, %v3203_v3  ;;  %v986_v44 = vsel %vm938_vm4, %v3446_v43, 0 }
 0x11c   : > { %2807 = vmatpush3.bf16.msra.mxu0 %v986_v44 }
 0x11d   : > { %2818 = vmatprep.subr.bf16.mxu0 %v3203_v3 }
 0x184   : > { %v1081_v5 = vpop.permute.xlu1 %1080 }
 0x185   : > { %v1086_v18 = vsel %vm817_vm3, %v1081_v5, 0 }
 0x1d6   : > { %v858_v46 = vpop.f32.mrf.mxu1 }
 0x1d7   : > { %v859_v47 = vadd.f32 %v858_v46, %v3455_v45 }
 0x1d8   : > { %v2792_v48 = vpop.f32.mrf.mxu1 }
 0x1d9   : > { %v911_v49 = vsel %vm910_vm5, %v859_v47, -inf }
 0x1da   : > { %912 = vmax.xlane.f32.xlu0 %v911_v49  ;;  %v861_v50 = vpop.f32.mrf.mxu1  ;;  %v904_v51 = vpop.f32.mrf.mxu0 }
 0x1db   : > { %v905_v52 = vadd.f32 %v904_v51, %v3455_v45 }
 0x1dc   : > { %v2793_v53 = vpop.f32.mrf.mxu1  ;;  %v2798_v54 = vpop.f32.mrf.mxu0 }
 0x1dd   : > { %v914_v55 = vsel %vm910_vm5, %v905_v52, -inf }
 0x1de   : > { %915 = vmax.xlane.f32.xlu0 %v914_v55  ;;  %v907_v56 = vpop.f32.mrf.mxu0 }
 0x1e0   : > { %v2799_v57 = vpop.f32.mrf.mxu0 }
 0x1f4   : > { %1030 = vrot.lane.b32.xlu0 %v2690_v19, %s3205_s4 }
 0x263   : > { %v913_v58 = vpop.xlane.xlu0 %912 }
 0x264   : > { %v917_v59 = vsub.f32 %v859_v47, %v913_v58 }
 0x266   : > { %v919_v60 = vmul.f32 1.442695, %v917_v59 }
 0x267   : > { %v916_v61 = vpop.xlane.xlu0 %915 }
 0x268   : > { %3048 = vpow2.f32 %v919_v60  ;;  %v918_v62 = vsub.f32 %v905_v52, %v916_v61 }
 0x26a   : > { %v921_v63 = vmul.f32 1.442695, %v918_v62 }
 0x26b   : > { %v1031_v12 = vpop.permute.xlu0 %1030 }
 0x26c   : > { %3050 = vpow2.f32 %v921_v63  ;;  %v1036_v15 = vsel %vm817_vm3, %v1031_v12, 0  ;;  %v3031_v63 = vld [vmem:[%s3341_s13 + $0x38] sm:$0xff]  }
 0x275   : > { %v3049_v0 = vpop.eup %3048 }
 0x276   : > { %v923_v1 = vsel %vm910_vm5, %v3049_v0, 0.0 }
 0x277   : > { %924 = vadd.xlane.f32.xlu1 %v923_v1 }
 0x279   : > { %v3051_v2 = vpop.eup %3050 }
 0x27a   : > { %v926_v4 = vsel %vm910_vm5, %v3051_v2, 0.0 }
 0x27b   : > { %927 = vadd.xlane.f32.xlu1 %v926_v4 }
 0x28c   : > { %1028 = vrot.lane.b32.xlu1 %v2688_v30, %s3205_s4 }
 0x290   : > { %1078 = vrot.lane.b32.xlu1 %v2689_v33, %s3205_s4 }
 0x300   : > { %v925_v6 = vpop.xlane.xlu1 %924 }
 0x301   : > { %3052 = vrcp.f32 %v925_v6 }
 0x304   : > { %v928_v9 = vpop.xlane.xlu1 %927 }
 0x305   : > { %3054 = vrcp.f32 %v928_v9 }
 0x308   : > { %v1029_v19 = vpop.permute.xlu1 %1028 }
 0x30c   : > { %v1079_v20 = vpop.permute.xlu1 %1078 }
 0x30e   : > { %v3053_v10 = vpop.eup %3052 }
 0x30f   : > { %v931_v11 = vmul.f32 %v3053_v10, %v3049_v0  ;;  %v3032_v0 = vld [vmem:[%s3341_s13 + $0x30] sm:$0xff]  }
 0x311   : > { %v933_v13 = vpack.c.bf16 %v931_v11, %v931_v11 }
 0x312   : > { %v3055_v14 = vpop.eup %3054 }
 0x313   : > { %2803 = vmatmul.mubr.msk.bf16.vlgmr.msra.gmra.mxu1 %vm910_vm5, %v933_v13  ;;  %v932_v16 = vmul.f32 %v3055_v14, %v3051_v2 }
 0x314   : > { %2813 = vmatpush3.bf16.xpose.msra.mxu1 %v1036_v15  ;;  %2814 = vmatprep.mubr.msk.bf16.mxu1 %vm3204_vm1, %v3203_v3 }
 0x315   : > { %v934_v17 = vpack.c.bf16 %v932_v16, %v932_v16  ;;  %2824 = vmatprep.subr.bf16.mxu1 %v3203_v3 }
 0x317   : > { %2809 = vmatmul.mubr.msk.bf16.vlgmr.msra.gmra.mxu0 %vm910_vm5, %v934_v17 }
 0x318   : > { %2819 = vmatpush3.bf16.xpose.msra.mxu0 %v1086_v18  ;;  %2820 = vmatprep.mubr.msk.bf16.mxu0 %vm3204_vm1, %v3203_v3 }
 0x319   : > { %2830 = vmatprep.subr.bf16.mxu0 %v3203_v3 }
 0x31b   : > { %2815 = vmatmul.mubr.msk.bf16.vlgmr.msra.gmra.mxu1 %vm817_vm3, %v1029_v19  ;;  %v2605_v19 = vld [vmem:[%s3356_s27 + $0x3] ss:$0 sm:$0xff] }
 0x31c   : > { %2826 = vmatprep.mubr.msk.bf16.mxu1 %vm3204_vm1, %v3203_v3 }
 0x31f   : > { %2821 = vmatmul.mubr.msk.bf16.vlgmr.msra.gmra.mxu0 %vm817_vm3, %v1079_v20 }
 0x320   : > { %2832 = vmatprep.mubr.msk.bf16.mxu0 %vm3204_vm1, %v3203_v3 }
 0x3d3   : > { %v3482_v21 = vpop.f32.mrf.mxu1 }
 0x3d5   : > { %v2804_v22 = vpop.f32.mrf.mxu1 }
 0x3d7   : > { %v979_v23 = vpop.f32.mrf.mxu1  ;;  %v3484_v24 = vpop.f32.mrf.mxu0 }
 0x3d9   : > { %v2805_v25 = vpop.f32.mrf.mxu1  ;;  %v2810_v26 = vpop.f32.mrf.mxu0 }
 0x3db   : > { %v1025_v27 = vpop.f32.mrf.mxu0  ;;  %v1072_v28 = vpop.f32.mrf.mxu1 }
 0x3dc   : > { %v1073_v29 = vadd.f32 %v1072_v28, %v3455_v45 }
 0x3dd   : > { %v2811_v30 = vpop.f32.mrf.mxu0  ;;  %v2816_v31 = vpop.f32.mrf.mxu1 }
 0x3de   : > { %v1128_v32 = vsel %vm910_vm5, %v1073_v29, -inf }
 0x3df   : > { %1129 = vmax.xlane.f32.xlu0 %v1128_v32  ;;  %v1075_v33 = vpop.f32.mrf.mxu1  ;;  %v1122_v34 = vpop.f32.mrf.mxu0 }
 0x3e0   : > { %v1123_v35 = vadd.f32 %v1122_v34, %v3455_v45 }
 0x3e1   : > { %v2817_v36 = vpop.f32.mrf.mxu1  ;;  %v2822_v37 = vpop.f32.mrf.mxu0 }
 0x3e2   : > { %v1131_v39 = vsel %vm910_vm5, %v1123_v35, -inf }
 0x3e3   : > { %1132 = vmax.xlane.f32.xlu1 %v1131_v39  ;;  %v1125_v40 = vpop.f32.mrf.mxu0 }
 0x3e4   : > { %v3034_v40 = vld [vmem:[%s3341_s13 + $0x50] sm:$0xff]  }
 0x3e5   : > { %v2823_v41 = vpop.f32.mrf.mxu0 }
 0x3e6   : > { %v3035_v41 = vld [vmem:[%s3719_s1] sm:$0xff]  }
 0x3f4   : > { %1200 = vrot.lane.b32.xlu1 %v3446_v43, %s3205_s4 }
 0x468   : > { %v1130_v42 = vpop.xlane.xlu0 %1129 }
 0x469   : > { %v1134_v44 = vsub.f32 %v1073_v29, %v1130_v42  ;;  %v3036_v42 = vld [vmem:[%s3341_s13 + $0x48] sm:$0xff]  }
 0x46b   : > { %v1136_v46 = vmul.f32 1.442695, %v1134_v44  ;;  %v3037_v44 = vld [vmem:[%s3341_s13 + $0x40] sm:$0xff]  }
 0x46c   : > { %v1133_v47 = vpop.xlane.xlu1 %1132 }
 0x46d   : > { %3056 = vpow2.f32 %v1136_v46  ;;  %v1135_v48 = vsub.f32 %v1123_v35, %v1133_v47 }
 0x46f   : > { %v1138_v49 = vmul.f32 1.442695, %v1135_v48 }
 0x470   : > { %v1201_v50 = vpop.permute.xlu1 %1200 }
 0x471   : > { %3058 = vpow2.f32 %v1138_v49  ;;  %v1206_v45 = vsel %vm938_vm4, %v1201_v50, 0 }
 0x472   : > { %2831 = vmatpush3.bf16.msra.mxu0 %v1206_v45 }
 0x473   : > { %2844 = vmatprep.subr.bf16.mxu0 %v3203_v3 }
 0x47a   : > { %v3057_v51 = vpop.eup %3056 }
 0x47b   : > { %v1140_v52 = vsel %vm910_vm5, %v3057_v51, 0.0 }
 0x47c   : > { %1141 = vadd.xlane.f32.xlu0 %v1140_v52 }
 0x47e   : > { %v3059_v53 = vpop.eup %3058 }
 0x47f   : > { %v1143_v43 = vsel %vm910_vm5, %v3059_v53, 0.0 }
 0x480   : > { %1144 = vadd.xlane.f32.xlu0 %v1143_v43 }
 0x496   : > { %1152 = vrot.lane.b32.xlu0 %v3442_v38, %s3205_s4 }
 0x505   : > { %v1142_v54 = vpop.xlane.xlu0 %1141 }
 0x506   : > { %3060 = vrcp.f32 %v1142_v54 }
 0x509   : > { %v1145_v55 = vpop.xlane.xlu0 %1144 }
 0x50a   : > { %3062 = vrcp.f32 %v1145_v55 }
 0x50d   : > { %v1153_v56 = vpop.permute.xlu0 %1152 }
 0x50e   : > { %v1158_v57 = vsel %vm938_vm4, %v1153_v56, 0  ;;  %v2610_v56 = vld [vmem:[%s3386_s11] ss:$0 sm:$0xff] }
 0x50f   : > { %2825 = vmatpush3.bf16.msra.mxu1 %v1158_v57 }
 0x510   : > { %2836 = vmatprep.subr.bf16.mxu1 %v3203_v3 }
 0x513   : > { %v3061_v58 = vpop.eup %3060 }
 0x514   : > { %v1148_v59 = vmul.f32 %v3061_v58, %v3057_v51 }
 0x516   : > { %v1150_v60 = vpack.c.bf16 %v1148_v59, %v1148_v59 }
 0x517   : > { %v3063_v61 = vpop.eup %3062 }
 0x518   : > { %2827 = vmatmul.mubr.msk.bf16.vlgmr.msra.gmra.mxu1 %vm910_vm5, %v1150_v60  ;;  %v1149_v62 = vmul.f32 %v3063_v61, %v3059_v53  ;;  %v2609_v53 = vld [vmem:[%s3381_s15] ss:$0 sm:$0xff]  ;;  %v3038_v60 = vld [vmem:[%s3341_s13 + $0x68] sm:$0xff]  }
 0x519   : > { %2840 = vmatprep.mubr.msk.bf16.mxu1 %vm3204_vm1, %v3203_v3  ;;  %2837 = vmatpush3.bf16.msra.mxu1 %v3031_v63 }
 0x51a   : > { %v1151_v38 = vpack.c.bf16 %v1149_v62, %v1149_v62  ;;  %2838 = vmatprep.subr.bf16.mxu1 %v3203_v3  ;;  %v3039_v62 = vld [vmem:[%s3341_s13 + $0x60] sm:$0xff]  }
 0x51c   : > { %2833 = vmatmul.mubr.msk.bf16.vlgmr.msra.gmra.mxu0 %vm910_vm5, %v1151_v38  ;;  %v2635_v38 = vld [vmem:[%s3356_s27 + $0x5] ss:$0 sm:$0xff] }
 0x51d   : > { %2848 = vmatprep.mubr.msk.bf16.mxu0 %vm3204_vm1, %v3203_v3  ;;  %2839 = vmatpush3.bf16.msra.mxu1 %v3032_v0 }
 0x51e   : > { %2852 = vmatprep.subr.bf16.mxu1 %v3203_v3  ;;  %2845 = vmatpush3.bf16.msra.mxu0 %v3036_v42 }
 0x51f   : > { %2846 = vmatprep.subr.bf16.mxu0 %v3203_v3 }
 0x522   : > { %2847 = vmatpush3.bf16.msra.mxu0 %v3037_v44 }
 0x523   : > { %2860 = vmatprep.subr.bf16.mxu0 %v3203_v3 }
 0x5d8   : > { %v1194_v1 = vpop.f32.mrf.mxu1 }
 0x5da   : > { %v2828_v2 = vpop.f32.mrf.mxu1 }
 0x5dc   : > { %v1197_v4 = vpop.f32.mrf.mxu1  ;;  %v1242_v5 = vpop.f32.mrf.mxu0 }
 0x5dd   : > { %v3015_v6 = vpack.i.bf16 %v1242_v5, %v1194_v1 }
 0x5de   : > { %v2829_v9 = vpop.f32.mrf.mxu1  ;;  %v2834_v10 = vpop.f32.mrf.mxu0 }
 0x5df   : > { %3016 = vrot.lane.b32.xlu1 %v3015_v6, %s3206_s16 }
 0x5e0   : > { %v1245_v11 = vpop.f32.mrf.mxu0 }
 0x5e2   : > { %v2835_v12 = vpop.f32.mrf.mxu0 }
 0x5e3   : > { %v2631_v12 = vld [vmem:[%s3356_s27 + $0x4] ss:$0 sm:$0xff] }
 0x651   : > { %v3017_v13 = vpop.permute.xlu1 %3016 }
 0x652   : > { %v3019_v14 = vunpack.i.h.bf16 %v3017_v13  ;;  %v3018_v15 = vunpack.i.l.bf16 %v3017_v13 }
 0x654   : > { %v1257_v16 = vsel %vm817_vm3, %v3484_v24, %v3019_v14  ;;  %v1256_v17 = vsel %vm817_vm3, %v3482_v21, %v3018_v15 }
 0x655   : > { %v1258_v18 = vpack.c.bf16 %v1257_v16, %v1256_v17 }
 0x657   : > { %2841 = vmatmul.mubr.msk.bf16.vlgmr.msra.gmra.mxu1 %vm634_vm2, %v1258_v18 }
 0x658   : > { %2856 = vmatprep.mubr.msk.bf16.mxu1 %vm3204_vm1, %v3203_v3 }
 0x717   : > { %v1314_v20 = vpop.f32.mrf.mxu1 }
 0x718   : > { %v1315_v22 = vadd.f32 %v2605_v19, %v1314_v20 }
 0x719   : > { %v2842_v23 = vpop.f32.mrf.mxu1 }
 0x71a   : > { %v1321_v25 = vadd.f32 %v1315_v22, %v3407_v7  ;;  %v2640_v22 = vld [vmem:[%s3356_s27 + $0x6] ss:$0 sm:$0xff] }
 0x71b   : > { %v1317_v26 = vpop.f32.mrf.mxu1 }
 0x71c   : > { %v1318_v27 = vadd.f32 %v2605_v19, %v1317_v26  ;;  %v1325_v28 = vsel %vm634_vm2, %v1321_v25, 0.0 }
 0x71d   : > { %1326 = vadd.xlane.f32.xlu1 %v1325_v28  ;;  %v2843_v24 = vpop.f32.mrf.mxu1 }
 0x71e   : > { %v1322_v21 = vadd.f32 %v1318_v27, %v3409_v8  ;;  %v3033_v8 = vld [vmem:[%s3341_s13 + $0x58] sm:$0xff]  }
 0x71f   : > { %2853 = vmatpush3.bf16.msra.mxu1 %v3033_v8 }
 0x720   : > { %v1328_v29 = vsel %vm634_vm2, %v1322_v21, 0.0  ;;  %2854 = vmatprep.subr.bf16.mxu1 %v3203_v3 }
 0x721   : > { %1329 = vadd.xlane.f32.xlu0 %v1328_v29 }
 0x723   : > { %2855 = vmatpush3.bf16.msra.mxu1 %v3034_v40 }
 0x724   : > { %2868 = vmatprep.subr.bf16.mxu1 %v3203_v3 }
 0x726   : > { %2857 = vmatmul.mubr.msk.bf16.vlgmr.msra.gmra.mxu1 %vm634_vm2, %v3035_v41 }
 0x727   : > { %2870 = vmatprep.mubr.msk.bf16.mxu1 %vm3204_vm1, %v3203_v3 }
 0x7a6   : > { %v1327_v30 = vpop.xlane.xlu1 %1326 }
 0x7a7   : > { %v1332_v31 = vmul.f32 0.03125, %v1327_v30 }
 0x7a9   : > { %v1334_v32 = vsub.f32 %v1321_v25, %v1332_v31 }
 0x7aa   : > { %v1330_v33 = vpop.xlane.xlu0 %1329 }
 0x7ab   : > { %v1333_v34 = vmul.f32 0.03125, %v1330_v33  ;;  %v1336_v35 = vmul.f32 %v1334_v32, %v1334_v32 }
 0x7ad   : > { %v1335_v7 = vsub.f32 %v1322_v21, %v1333_v34  ;;  %v1338_v36 = vsel %vm634_vm2, %v1336_v35, 0.0 }
 0x7ae   : > { %1339 = vadd.xlane.f32.xlu0 %v1338_v36 }
 0x7af   : > { %v1337_v37 = vmul.f32 %v1335_v7, %v1335_v7 }
 0x7b1   : > { %v1341_v39 = vsel %vm634_vm2, %v1337_v37, 0.0 }
 0x7b2   : > { %1342 = vadd.xlane.f32.xlu0 %v1341_v39 }
 0x7e6   : > { %v1519_v63 = vpop.f32.mrf.mxu1 }
 0x7e7   : > { %v1520_v0 = vadd.f32 %v2635_v38, %v1519_v63 }
 0x7e8   : > { %v2858_v1 = vpop.f32.mrf.mxu1 }
 0x7e9   : > { %v2696_v2 = vpack.c.bf16 %v1520_v0, %v1520_v0 }
 0x7ea   : > { %v1522_v4 = vpop.f32.mrf.mxu1 }
 0x7eb   : > { %v1609_v5 = vsel %vm817_vm3, %v2696_v2, 0  ;;  %v1523_v6 = vadd.f32 %v2635_v38, %v1522_v4 }
 0x7ec   : > { %v2859_v9 = vpop.f32.mrf.mxu1  ;;  %2869 = vmatpush3.bf16.xpose.msra.mxu1 %v1609_v5 }
 0x7ed   : > { %v3559_v10 = vpack.c.bf16 %v1523_v6, %v1523_v6  ;;  %2880 = vmatprep.subr.bf16.mxu1 %v3203_v3 }
 0x7ef   : > { %v1655_v11 = vsel %vm817_vm3, %v3559_v10, 0 }
 0x837   : > { %v1340_v46 = vpop.xlane.xlu0 %1339 }
 0x838   : > { %v1344_v47 = vmul.f32 0.03125, %v1340_v46 }
 0x83a   : > { %v1346_v48 = vadd.f32 1e-05, %v1344_v47 }
 0x83b   : > { %v1343_v49 = vpop.xlane.xlu0 %1342 }
 0x83c   : > { %3064 = vrsqrt.f32 %v1346_v48  ;;  %v1345_v50 = vmul.f32 0.03125, %v1343_v49 }
 0x83e   : > { %v1347_v45 = vadd.f32 1e-05, %v1345_v50 }
 0x840   : > { %3066 = vrsqrt.f32 %v1347_v45 }
 0x849   : > { %v3065_v51 = vpop.eup %3064 }
 0x84a   : > { %v1350_v52 = vmul.f32 %v3065_v51, %v1334_v32 }
 0x84c   : > { %v1358_v55 = vmul.f32 %v2609_v53, %v1350_v52 }
 0x84d   : > { %v3067_v43 = vpop.eup %3066 }
 0x84e   : > { %v1351_v54 = vmul.f32 %v3067_v43, %v1335_v7  ;;  %v3541_v58 = vadd.f32 %v2610_v56, %v1358_v55 }
 0x850   : > { %v1359_v57 = vmul.f32 %v2609_v53, %v1351_v54 }
 0x852   : > { %v3543_v59 = vadd.f32 %v2610_v56, %v1359_v57 }
 0x854   : > { %v1368_v61 = vpack.c.bf16 %v3543_v59, %v3541_v58 }
 0x856   : > { %2849 = vmatmul.mubr.msk.bf16.vlgmr.msra.gmra.mxu0 %vm634_vm2, %v1368_v61 }
 0x857   : > { %2861 = vmatpush3.bf16.msra.mxu0 %v3038_v60  ;;  %2864 = vmatprep.mubr.msk.bf16.mxu0 %vm3204_vm1, %v3203_v3 }
 0x858   : > { %2862 = vmatprep.subr.bf16.mxu0 %v3203_v3 }
 0x85b   : > { %2863 = vmatpush3.bf16.msra.mxu0 %v3039_v62 }
 0x85c   : > { %2874 = vmatprep.subr.bf16.mxu0 %v3203_v3 }
 0x85e   : > { %2865 = vmatmul.mubr.msk.bf16.vlgmr.msra.gmra.mxu0 %vm634_vm2, %v3035_v41 }
 0x85f   : > { %2876 = vmatprep.mubr.msk.bf16.mxu0 %vm3204_vm1, %v3203_v3  ;;  %2875 = vmatpush3.bf16.xpose.msra.mxu0 %v1655_v11 }
 0x860   : > { %2886 = vmatprep.subr.bf16.mxu0 %v3203_v3 }
 0x916   : > { %v1452_v13 = vpop.f32.mrf.mxu0 }
 0x917   : > { %v1453_v14 = vadd.f32 %v2631_v12, %v1452_v13 }
 0x918   : > { %v2850_v15 = vpop.f32.mrf.mxu0 }
 0x919   : > { %v1585_v16 = vmul.f32 0.25, %v1453_v14 }
 0x91a   : > { %v1455_v17 = vpop.f32.mrf.mxu0 }
 0x91b   : > { %v2694_v18 = vpack.c.bf16 %v1585_v16, %v1585_v16  ;;  %v1456_v19 = vadd.f32 %v2631_v12, %v1455_v17 }
 0x91c   : > { %v2851_v20 = vpop.f32.mrf.mxu0 }
 0x91d   : > { %v1586_v23 = vmul.f32 0.25, %v1456_v19  ;;  %2871 = vmatmul.mubr.msk.bf16.vlgmr.msra.gmra.mxu1 %vm817_vm3, %v2694_v18 }
 0x91e   : > { %v1578_v25 = vpop.f32.mrf.mxu0  ;;  %2882 = vmatprep.mubr.msk.bf16.mxu1 %vm3204_vm1, %v3203_v3 }
 0x91f   : > { %v2695_v26 = vpack.c.bf16 %v1586_v23, %v1586_v23  ;;  %v1579_v27 = vadd.f32 %v2640_v22, %v1578_v25 }
 0x920   : > { %v2866_v28 = vpop.f32.mrf.mxu0 }
 0x921   : > { %2877 = vmatmul.mubr.msk.bf16.vlgmr.msra.gmra.mxu0 %vm817_vm3, %v2695_v26  ;;  %v3571_v24 = vpack.c.bf16 %v1579_v27, %v1579_v27 }
 0x922   : > { %v1581_v21 = vpop.f32.mrf.mxu0  ;;  %2888 = vmatprep.mubr.msk.bf16.mxu0 %vm3204_vm1, %v3203_v3 }
 0x923   : > { %v1725_v29 = vsel %vm938_vm4, %v3571_v24, 0  ;;  %v1582_v30 = vadd.f32 %v2640_v22, %v1581_v21 }
 0x924   : > { %v2867_v31 = vpop.f32.mrf.mxu0  ;;  %2881 = vmatpush3.bf16.msra.mxu1 %v1725_v29 }
 0x925   : > { %v3577_v32 = vpack.c.bf16 %v1582_v30, %v1582_v30  ;;  %2892 = vmatprep.subr.bf16.mxu1 %v3203_v3 }
 0x927   : > { %v1771_v33 = vsel %vm938_vm4, %v3577_v32, 0 }
 0x928   : > { %2887 = vmatpush3.bf16.msra.mxu0 %v1771_v33 }
 0x929   : > { %2898 = vmatprep.subr.bf16.mxu0 %v3203_v3 }
 0x9dd   : > { %v1645_v34 = vpop.f32.mrf.mxu1 }
 0x9de   : > { %v1697_v35 = vsel %vm910_vm5, %v1645_v34, -inf }
 0x9df   : > { %1698 = vmax.xlane.f32.xlu1 %v1697_v35  ;;  %v2872_v7 = vpop.f32.mrf.mxu1 }
 0x9e1   : > { %v1648_v36 = vpop.f32.mrf.mxu1  ;;  %v1691_v37 = vpop.f32.mrf.mxu0 }
 0x9e2   : > { %v1700_v39 = vsel %vm910_vm5, %v1691_v37, -inf }
 0x9e3   : > { %v2873_v8 = vpop.f32.mrf.mxu1  ;;  %1701 = vmax.xlane.f32.xlu0 %v1700_v39  ;;  %v2878_v40 = vpop.f32.mrf.mxu0 }
 0x9e5   : > { %v1694_v41 = vpop.f32.mrf.mxu0 }
 0x9e7   : > { %v2879_v42 = vpop.f32.mrf.mxu0 }
 0x9f0   : > { %1815 = vrot.lane.b32.xlu1 %v2696_v2, %s3205_s4 }
 0xa68   : > { %v1699_v44 = vpop.xlane.xlu1 %1698 }
 0xa69   : > { %v1703_v46 = vsub.f32 %v1645_v34, %v1699_v44 }
 0xa6b   : > { %v1705_v47 = vmul.f32 1.442695, %v1703_v46 }
 0xa6c   : > { %v1702_v48 = vpop.xlane.xlu0 %1701  ;;  %v1816_v43 = vpop.permute.xlu1 %1815 }
 0xa6d   : > { %3068 = vpow2.f32 %v1705_v47  ;;  %v1704_v49 = vsub.f32 %v1691_v37, %v1702_v48  ;;  %v1821_v62 = vsel %vm817_vm3, %v1816_v43, 0  ;;  %v3040_v48 = vld [vmem:[%s3341_s13 + $0x78] sm:$0xff]  }
 0xa6f   : > { %v1707_v50 = vmul.f32 1.442695, %v1704_v49  ;;  %v3041_v49 = vld [vmem:[%s3341_s13 + $0x70] sm:$0xff]  }
 0xa71   : > { %3070 = vpow2.f32 %v1707_v50 }
 0xa7a   : > { %v3069_v45 = vpop.eup %3068 }
 0xa7b   : > { %v1709_v51 = vsel %vm910_vm5, %v3069_v45, 0.0 }
 0xa7c   : > { %1710 = vadd.xlane.f32.xlu1 %v1709_v51 }
 0xa7e   : > { %v3071_v52 = vpop.eup %3070 }
 0xa7f   : > { %v1712_v53 = vsel %vm910_vm5, %v3071_v52, 0.0 }
 0xa80   : > { %1713 = vadd.xlane.f32.xlu0 %v1712_v53 }
 0xa8d   : > { %1813 = vrot.lane.b32.xlu1 %v2694_v18, %s3205_s4 }
 0xa91   : > { %1863 = vrot.lane.b32.xlu1 %v2695_v26, %s3205_s4 }
 0xa96   : > { %1865 = vrot.lane.b32.xlu0 %v3559_v10, %s3205_s4 }
 0xb05   : > { %v1711_v54 = vpop.xlane.xlu1 %1710 }
 0xb06   : > { %3072 = vrcp.f32 %v1711_v54 }
 0xb09   : > { %v1714_v55 = vpop.xlane.xlu0 %1713  ;;  %v1814_v2 = vpop.permute.xlu1 %1813 }
 0xb0a   : > { %3074 = vrcp.f32 %v1714_v55 }
 0xb0d   : > { %v1866_v63 = vpop.permute.xlu0 %1865  ;;  %v1864_v4 = vpop.permute.xlu1 %1863 }
 0xb0e   : > { %v1871_v1 = vsel %vm817_vm3, %v1866_v63, 0 }
 0xb13   : > { %v3073_v56 = vpop.eup %3072 }
 0xb14   : > { %v1717_v57 = vmul.f32 %v3073_v56, %v3069_v45 }
 0xb16   : > { %v1719_v60 = vpack.c.bf16 %v1717_v57, %v1717_v57 }
 0xb17   : > { %v3075_v61 = vpop.eup %3074 }
 0xb18   : > { %2883 = vmatmul.mubr.msk.bf16.vlgmr.msra.gmra.mxu1 %vm910_vm5, %v1719_v60  ;;  %v1718_v38 = vmul.f32 %v3075_v61, %v3071_v52 }
 0xb19   : > { %2893 = vmatpush3.bf16.xpose.msra.mxu1 %v1821_v62  ;;  %2894 = vmatprep.mubr.msk.bf16.mxu1 %vm3204_vm1, %v3203_v3 }
 0xb1a   : > { %v1720_v0 = vpack.c.bf16 %v1718_v38, %v1718_v38  ;;  %2904 = vmatprep.subr.bf16.mxu1 %v3203_v3 }
 0xb1c   : > { %2889 = vmatmul.mubr.msk.bf16.vlgmr.msra.gmra.mxu0 %vm910_vm5, %v1720_v0  ;;  %v2658_v0 = vld [vmem:[%s3356_s27 + $0x7] ss:$0 sm:$0xff] }
 0xb1d   : > { %2899 = vmatpush3.bf16.xpose.msra.mxu0 %v1871_v1  ;;  %2900 = vmatprep.mubr.msk.bf16.mxu0 %vm3204_vm1, %v3203_v3 }
 0xb1e   : > { %2910 = vmatprep.subr.bf16.mxu0 %v3203_v3 }
 0xb20   : > { %2895 = vmatmul.mubr.msk.bf16.vlgmr.msra.gmra.mxu1 %vm817_vm3, %v1814_v2 }
 0xb21   : > { %2906 = vmatprep.mubr.msk.bf16.mxu1 %vm3204_vm1, %v3203_v3 }
 0xb24   : > { %2901 = vmatmul.mubr.msk.bf16.vlgmr.msra.gmra.mxu0 %vm817_vm3, %v1864_v4 }
 0xb25   : > { %2912 = vmatprep.mubr.msk.bf16.mxu0 %vm3204_vm1, %v3203_v3 }
 0xbd8   : > { %v3608_v5 = vpop.f32.mrf.mxu1 }
 0xbda   : > { %v2884_v6 = vpop.f32.mrf.mxu1 }
 0xbdc   : > { %v1764_v9 = vpop.f32.mrf.mxu1  ;;  %v3610_v10 = vpop.f32.mrf.mxu0 }
 0xbde   : > { %v2885_v11 = vpop.f32.mrf.mxu1  ;;  %v2890_v12 = vpop.f32.mrf.mxu0 }
 0xbe0   : > { %v1810_v13 = vpop.f32.mrf.mxu0  ;;  %v1857_v14 = vpop.f32.mrf.mxu1 }
 0xbe1   : > { %v1913_v15 = vsel %vm910_vm5, %v1857_v14, -inf }
 0xbe2   : > { %1914 = vmax.xlane.f32.xlu1 %v1913_v15  ;;  %v2891_v16 = vpop.f32.mrf.mxu0  ;;  %v2896_v17 = vpop.f32.mrf.mxu1 }
 0xbe4   : > { %v1860_v18 = vpop.f32.mrf.mxu1  ;;  %v1907_v19 = vpop.f32.mrf.mxu0 }
 0xbe5   : > { %v1916_v20 = vsel %vm910_vm5, %v1907_v19, -inf }
 0xbe6   : > { %v2897_v22 = vpop.f32.mrf.mxu1  ;;  %1917 = vmax.xlane.f32.xlu0 %v1916_v20  ;;  %v2902_v23 = vpop.f32.mrf.mxu0 }
 0xbe8   : > { %v1910_v25 = vpop.f32.mrf.mxu0 }
 0xbe9   : > { %v3043_v25 = vld [vmem:[%s3361_s12] sm:$0xff]  }
 0xbea   : > { %v2903_v26 = vpop.f32.mrf.mxu0 }
 0xbeb   : > { %v3044_v26 = vld [vmem:[%s3371_s29 + $0x18] sm:$0xff]  }
 0xbf3   : > { %1937 = vrot.lane.b32.xlu1 %v3571_v24, %s3205_s4 }
 0xc6b   : > { %v1915_v27 = vpop.xlane.xlu1 %1914 }
 0xc6c   : > { %v1919_v28 = vsub.f32 %v1857_v14, %v1915_v27 }
 0xc6e   : > { %v1921_v21 = vmul.f32 1.442695, %v1919_v28 }
 0xc6f   : > { %v1938_v29 = vpop.permute.xlu1 %1937  ;;  %v1918_v30 = vpop.xlane.xlu0 %1917 }
 0xc70   : > { %3076 = vpow2.f32 %v1921_v21  ;;  %v1943_v31 = vsel %vm938_vm4, %v1938_v29, 0  ;;  %v1920_v33 = vsub.f32 %v1907_v19, %v1918_v30 }
 0xc71   : > { %2905 = vmatpush3.bf16.msra.mxu1 %v1943_v31 }
 0xc72   : > { %v1923_v34 = vmul.f32 1.442695, %v1920_v33  ;;  %2916 = vmatprep.subr.bf16.mxu1 %v3203_v3 }
 0xc74   : > { %3078 = vpow2.f32 %v1923_v34 }
 0xc7d   : > { %v3077_v35 = vpop.eup %3076 }
 0xc7e   : > { %v1925_v7 = vsel %vm910_vm5, %v3077_v35, 0.0 }
 0xc7f   : > { %1926 = vadd.xlane.f32.xlu0 %v1925_v7 }
 0xc81   : > { %v3079_v36 = vpop.eup %3078 }
 0xc82   : > { %v1928_v24 = vsel %vm910_vm5, %v3079_v36, 0.0 }
 0xc83   : > { %1929 = vadd.xlane.f32.xlu0 %v1928_v24 }
 0xc99   : > { %1985 = vrot.lane.b32.xlu0 %v3577_v32, %s3205_s4 }
 0xd08   : > { %v1927_v37 = vpop.xlane.xlu0 %1926 }
 0xd09   : > { %3080 = vrcp.f32 %v1927_v37  ;;  %v2665_v37 = vld [vmem:[%s3386_s11 + $0x1] ss:$0 sm:$0xff] }
 0xd0c   : > { %v1930_v39 = vpop.xlane.xlu0 %1929 }
 0xd0d   : > { %3082 = vrcp.f32 %v1930_v39 }
 0xd10   : > { %v1986_v8 = vpop.permute.xlu0 %1985 }
 0xd11   : > { %v1991_v40 = vsel %vm938_vm4, %v1986_v8, 0 }
 0xd12   : > { %2911 = vmatpush3.bf16.msra.mxu0 %v1991_v40 }
 0xd13   : > { %2924 = vmatprep.subr.bf16.mxu0 %v3203_v3 }
 0xd16   : > { %v3081_v41 = vpop.eup %3080 }
 0xd17   : > { %v1933_v42 = vmul.f32 %v3081_v41, %v3077_v35  ;;  %v2664_v35 = vld [vmem:[%s3381_s15 + $0x1] ss:$0 sm:$0xff] }
 0xd19   : > { %v1935_v44 = vpack.c.bf16 %v1933_v42, %v1933_v42  ;;  %v3045_v42 = vld [vmem:[%s3371_s29 + $0x10] sm:$0xff]  }
 0xd1a   : > { %v3083_v46 = vpop.eup %3082 }
 0xd1b   : > { %2907 = vmatmul.mubr.msk.bf16.vlgmr.msra.gmra.mxu1 %vm910_vm5, %v1935_v44  ;;  %v1934_v47 = vmul.f32 %v3083_v46, %v3079_v36  ;;  %v3046_v44 = vld [vmem:[%s3371_s29 + $0x8] sm:$0xff]   ;;  %v3047_v46 = vld [vmem:[%s3371_s29] sm:$0xff]  }
 0xd1c   : > { %2920 = vmatprep.mubr.msk.bf16.mxu1 %vm3204_vm1, %v3203_v3  ;;  %2917 = vmatpush3.bf16.msra.mxu1 %v3040_v48 }
 0xd1d   : > { %v1936_v32 = vpack.c.bf16 %v1934_v47, %v1934_v47  ;;  %2918 = vmatprep.subr.bf16.mxu1 %v3203_v3  ;;  %v2666_v47 = vld [vmem:[%s556_s24] ss:$0 sm:$0xff] }
 0xd1f   : > { %2913 = vmatmul.mubr.msk.bf16.vlgmr.msra.gmra.mxu0 %vm910_vm5, %v1936_v32 }
 0xd20   : > { %2928 = vmatprep.mubr.msk.bf16.mxu0 %vm3204_vm1, %v3203_v3  ;;  %2919 = vmatpush3.bf16.msra.mxu1 %v3041_v49 }
 0xd21   : > { %2932 = vmatprep.subr.bf16.mxu1 %v3203_v3 }
 0xddb   : > { %v1979_v50 = vpop.f32.mrf.mxu1 }
 0xddd   : > { %v2908_v45 = vpop.f32.mrf.mxu1 }
 0xddf   : > { %v1982_v51 = vpop.f32.mrf.mxu1  ;;  %v2027_v52 = vpop.f32.mrf.mxu0 }
 0xde0   : > { %v3020_v53 = vpack.i.bf16 %v2027_v52, %v1979_v50 }
 0xde1   : > { %v2909_v43 = vpop.f32.mrf.mxu1  ;;  %v2914_v54 = vpop.f32.mrf.mxu0 }
 0xde2   : > { %3021 = vrot.lane.b32.xlu1 %v3020_v53, %s3206_s16  ;;  %v2675_v54 = vld [vmem:[%s564_s14] ss:$0 sm:$0xff] }
 0xde3   : > { %v2030_v55 = vpop.f32.mrf.mxu0 }
 0xde5   : > { %v2915_v56 = vpop.f32.mrf.mxu0 }
 0xe54   : > { %v3022_v57 = vpop.permute.xlu1 %3021 }
 0xe55   : > { %v3024_v60 = vunpack.i.h.bf16 %v3022_v57  ;;  %v3023_v61 = vunpack.i.l.bf16 %v3022_v57 }
 0xe57   : > { %v2042_v62 = vsel %vm817_vm3, %v3610_v10, %v3024_v60  ;;  %v2041_v38 = vsel %vm817_vm3, %v3608_v5, %v3023_v61 }
 0xe58   : > { %v2043_v63 = vpack.c.bf16 %v2042_v62, %v2041_v38 }
 0xe5a   : > { %2921 = vmatmul.mubr.msk.bf16.vlgmr.msra.gmra.mxu1 %vm634_vm2, %v2043_v63 }
 0xe5b   : > { %2940 = vmatprep.mubr.msk.bf16.mxu1 %vm3204_vm1, %v3203_v3  ;;  %2933 = vmatpush3.bf16.msra.mxu1 %v3044_v26 }
 0xe5c   : > { %2934 = vmatprep.subr.bf16.mxu1 %v3203_v3 }
 0xe5f   : > { %2935 = vmatpush3.bf16.msra.mxu1 %v3045_v42 }
 0xe60   : > { %2936 = vmatprep.subr.bf16.mxu1 %v3203_v3 }
 0xe63   : > { %2937 = vmatpush3.bf16.msra.mxu1 %v3046_v44 }
 0xe64   : > { %2938 = vmatprep.subr.bf16.mxu1 %v3203_v3 }
 0xe67   : > { %2939 = vmatpush3.bf16.msra.mxu1 %v3047_v46 }
 0xf1a   : > { %v2099_v1 = vpop.f32.mrf.mxu1 }
 0xf1b   : > { %v2100_v2 = vadd.f32 %v2658_v0, %v2099_v1 }
 0xf1c   : > { %v2922_v4 = vpop.f32.mrf.mxu1 }
 0xf1d   : > { %v2106_v6 = vadd.f32 %v2100_v2, %v3541_v58 }
 0xf1e   : > { %v2102_v9 = vpop.f32.mrf.mxu1 }
 0xf1f   : > { %v2103_v11 = vadd.f32 %v2658_v0, %v2102_v9  ;;  %v2112_v12 = vsel %vm634_vm2, %v2106_v6, 0.0 }
 0xf20   : > { %2113 = vadd.xlane.f32.xlu1 %v2112_v12  ;;  %v2923_v10 = vpop.f32.mrf.mxu1 }
 0xf21   : > { %v2107_v5 = vadd.f32 %v2103_v11, %v3543_v59  ;;  %v3042_v59 = vld [vmem:[%s3361_s12 + $0x8] sm:$0xff]  }
 0xf22   : > { %2925 = vmatpush3.bf16.msra.mxu0 %v3042_v59 }
 0xf23   : > { %v2115_v13 = vsel %vm634_vm2, %v2107_v5, 0.0  ;;  %2926 = vmatprep.subr.bf16.mxu0 %v3203_v3 }
 0xf24   : > { %2116 = vadd.xlane.f32.xlu0 %v2115_v13 }
 0xf26   : > { %2927 = vmatpush3.bf16.msra.mxu0 %v3043_v25 }
 0xfa9   : > { %v2114_v14 = vpop.xlane.xlu1 %2113 }
 0xfaa   : > { %v2118_v15 = vmul.f32 0.03125, %v2114_v14 }
 0xfac   : > { %v2120_v16 = vsub.f32 %v2106_v6, %v2118_v15 }
 0xfad   : > { %v2117_v17 = vpop.xlane.xlu0 %2116 }
 0xfae   : > { %v2119_v18 = vmul.f32 0.03125, %v2117_v17  ;;  %v2122_v58 = vmul.f32 %v2120_v16, %v2120_v16 }
 0xfb0   : > { %v2121_v19 = vsub.f32 %v2107_v5, %v2119_v18  ;;  %v2124_v20 = vsel %vm634_vm2, %v2122_v58, 0.0 }
 0xfb1   : > { %2125 = vadd.xlane.f32.xlu0 %v2124_v20  ;;  %v2678_v20 = vld [vmem:[%s3381_s15 + $0x2] ss:$0 sm:$0xff] }
 0xfb2   : > { %v2123_v22 = vmul.f32 %v2121_v19, %v2121_v19 }
 0xfb4   : > { %v2127_v23 = vsel %vm634_vm2, %v2123_v22, 0.0 }
 0xfb5   : > { %2128 = vadd.xlane.f32.xlu1 %v2127_v23  ;;  %v2679_v23 = vld [vmem:[%s3386_s11 + $0x2] ss:$0 sm:$0xff] }
0x103a   : > { %v2126_v27 = vpop.xlane.xlu0 %2125 }
0x103b   : > { %v2130_v28 = vmul.f32 0.03125, %v2126_v27 }
0x103d   : > { %v2132_v21 = vadd.f32 1e-05, %v2130_v28 }
0x103e   : > { %v2129_v29 = vpop.xlane.xlu1 %2128 }
0x103f   : > { %3084 = vrsqrt.f32 %v2132_v21  ;;  %v2131_v30 = vmul.f32 0.03125, %v2129_v29 }
0x1041   : > { %v2133_v31 = vadd.f32 1e-05, %v2131_v30 }
0x1043   : > { %3086 = vrsqrt.f32 %v2133_v31 }
0x104c   : > { %v3085_v33 = vpop.eup %3084 }
0x104d   : > { %v2136_v34 = vmul.f32 %v3085_v33, %v2120_v16 }
0x104f   : > { %v2144_v24 = vmul.f32 %v2664_v35, %v2136_v34 }
0x1050   : > { %v3087_v7 = vpop.eup %3086 }
0x1051   : > { %v2137_v36 = vmul.f32 %v3087_v7, %v2121_v19  ;;  %v2152_v8 = vadd.f32 %v2665_v37, %v2144_v24 }
0x1053   : > { %v2145_v39 = vmul.f32 %v2664_v35, %v2137_v36 }
0x1055   : > { %v2153_v40 = vadd.f32 %v2665_v37, %v2145_v39 }
0x1057   : > { %v2154_v41 = vpack.c.bf16 %v2153_v40, %v2152_v8 }
0x1059   : > { %2929 = vmatmul.mubr.msk.bf16.vlgmr.msra.gmra.mxu0 %vm634_vm2, %v2154_v41 }
0x1119   : > { %v2215_v32 = vpop.f32.mrf.mxu0 }
0x111a   : > { %v2216_v49 = vadd.f32 %v2666_v47, %v2215_v32 }
0x111b   : > { %v2930_v48 = vpop.f32.mrf.mxu0 }
0x111c   : > { %v2222_v52 = vmax.f32 %v2216_v49, 0.0 }
0x111d   : > { %v2218_v50 = vpop.f32.mrf.mxu0 }
0x111e   : > { %v2219_v45 = vadd.f32 %v2666_v47, %v2218_v50 }
0x111f   : > { %v2931_v51 = vpop.f32.mrf.mxu0 }
0x1120   : > { %v2223_v53 = vmax.f32 %v2219_v45, 0.0 }
0x1122   : > { %v2224_v43 = vpack.c.bf16 %v2223_v53, %v2222_v52 }
0x1124   : > { %2941 = vmatmul.mubr.msk.bf16.vlgmr.msra.gmra.mxu1 %vm2257_vm6, %v2224_v43 }
0x11e4   : > { %v2295_v3 = vpop.f32.mrf.mxu1 }
0x11e5   : > { %v2302_v55 = vadd.f32 %v2295_v3, %v2152_v8 }
0x11e6   : > { %v2942_v56 = vpop.f32.mrf.mxu1 }
0x11e7   : > { %v2311_v57 = vadd.f32 %v2675_v54, %v2302_v55 }
0x11e8   : > { %v2298_v60 = vpop.f32.mrf.mxu1 }
0x11e9   : > { %v2303_v61 = vadd.f32 %v2298_v60, %v2153_v40  ;;  %v2317_v62 = vsel %vm634_vm2, %v2311_v57, 0.0 }
0x11ea   : > { %2318 = vadd.xlane.f32.xlu0 %v2317_v62  ;;  %v2943_v38 = vpop.f32.mrf.mxu1 }
0x11eb   : > { %v2312_v63 = vadd.f32 %v2675_v54, %v2303_v61 }
0x11ed   : > { %v2320_v0 = vsel %vm634_vm2, %v2312_v63, 0.0 }
0x11ee   : > { %2321 = vadd.xlane.f32.xlu1 %v2320_v0 }
0x1273   : > { %v2319_v1 = vpop.xlane.xlu0 %2318 }
0x1274   : > { %v2323_v2 = vmul.f32 0.03125, %v2319_v1 }
0x1276   : > { %v2325_v4 = vsub.f32 %v2311_v57, %v2323_v2 }
0x1277   : > { %v2322_v6 = vpop.xlane.xlu1 %2321 }
0x1278   : > { %v2324_v9 = vmul.f32 0.03125, %v2322_v6  ;;  %v2327_v11 = vmul.f32 %v2325_v4, %v2325_v4 }
0x127a   : > { %v2326_v12 = vsub.f32 %v2312_v63, %v2324_v9  ;;  %v2329_v10 = vsel %vm634_vm2, %v2327_v11, 0.0 }
0x127b   : > { %2330 = vadd.xlane.f32.xlu0 %v2329_v10 }
0x127c   : > { %v2328_v5 = vmul.f32 %v2326_v12, %v2326_v12 }
0x127e   : > { %v2332_v13 = vsel %vm634_vm2, %v2328_v5, 0.0 }
0x127f   : > { %2333 = vadd.xlane.f32.xlu1 %v2332_v13 }
0x1304   : > { %v2331_v14 = vpop.xlane.xlu0 %2330 }
0x1305   : > { %v2335_v15 = vmul.f32 0.03125, %v2331_v14 }
0x1307   : > { %v2337_v16 = vadd.f32 1e-05, %v2335_v15 }
0x1308   : > { %v2334_v17 = vpop.xlane.xlu1 %2333 }
0x1309   : > { %3088 = vrsqrt.f32 %v2337_v16  ;;  %v2336_v18 = vmul.f32 0.03125, %v2334_v17 }
0x130b   : > { %v2338_v58 = vadd.f32 1e-05, %v2336_v18 }
0x130d   : > { %3090 = vrsqrt.f32 %v2338_v58 }
0x1316   : > { %v3089_v19 = vpop.eup %3088 }
0x1317   : > { %v2341_v22 = vmul.f32 %v3089_v19, %v2325_v4 }
0x1319   : > { %v2349_v59 = vmul.f32 %v2678_v20, %v2341_v22 }
0x131a   : > { %v3091_v25 = vpop.eup %3090 }
0x131b   : > { %v2357_v26 = vadd.f32 %v2679_v23, %v2349_v59  ;;  %v2342_v27 = vmul.f32 %v3091_v25, %v2326_v12 }
0x131d   : > { %2359 = vst.msk [vmem:[#allocation2] sm:$0xff] %vm634_vm2, %v2357_v26  ;;  %v2350_v28 = vmul.f32 %v2678_v20, %v2342_v27  ;;  %2364 = sbr.rel (%p2680_p9) target bundleno = 4899 (0x1323), region = 76 }
0x131f   : > { %v2358_v21 = vadd.f32 %v2679_v23, %v2350_v28 }
0x1321   : > { %2360 = vst.msk [vmem:[#allocation2 + $0x8] sm:$0xff] %vm634_vm2, %v2358_v21 }
0x1322   : > { %2365 = vst.msk [vmem:[#allocation6] sm:$0xff] %vm634_vm2, %v2357_v26  ;;  %2366 = vst.msk [vmem:[#allocation6 + $0x8] sm:$0xff] %vm634_vm2, %v2358_v21 }
0x1323 PF: > { %s3748_s23 = sadd.s32 4294967295, %s3198_s22   ;;  %s3207_s14 = smov [#allocation6]  }
0x1324   : > { %p3685_p10 = scmp.eq.s32.totalorder %s3748_s23, 1  ;;  %s2376_s15 = sshll.u32 %s3207_s14, 4  ;;  %s2377_s15 = int_to_ptr.vmem [resolvable:$true] %s2376_s15 }
0x1325   : > { %s3120_s25 = scalar_lea.vmem %s2377_s15, 256  ;;  %p3127_p0 = scmp.lt.s32.totalorder %s2377_s15, %s2377_s15 }
0x1326   : > { %p3121_p11 = scmp.ne.s32.totalorder %s2377_s15, %s3120_s25  ;;  %p3128_p1 = scmp.lt.s32.totalorder %s3120_s25, %s3120_s25 }
0x1328   : > { %p3122_p12 = pnand %p3121_p11, %p3685_p10  ;;  %p3129_p2 = por %p3128_p1, %p3127_p0 }
0x132a   : > { %p3123_p13 = pneg %p3122_p12 }
0x132c   : > { %p3130_p3 = pnand %p3129_p2, %p3123_p13 }
0x132e   : > { %3133 = shalt.err (!%p3130_p3)
}
0x132f   : > { %s3208_s20 = smov 128   ;;  %s3209_s11 = smov 8  }
0x1330   : > { %s3750_s18 = sld [smem:[#allocation16_spill]] }
0x1336   : > { %2948 = dma.vmem_to_hbm [thread:$0]  (%p3685_p10), %s2377_s15, 256, %s3750_s18, [#allocation5], %s3208_s20, %s3208_s20, %s3209_s11  }
0x1337   : > { %3173 = dma.done.wait (%p3685_p10), [#allocation5], 256  }
0x1338   : > { %3175 = vsyncadd (%p3685_p10), [#allocation5], 4294967040 }
0x1339 PF: > { %s25_s22 = sadd.s32 1, %s3198_s22   ;;  %s3751_s17 = sld [smem:[#allocation9_spill]] }
0x133a   : > { %p22_p4 = scmp.ge.s32.totalorder %s25_s22, 4   ;;  %s3752_s18 = sld [smem:[#allocation10_spill]] }
0x133b   : > { %s3753_s19 = sld [smem:[#allocation13_spill]] }
0x133c   : > { %s3754_s20 = sld [smem:[#allocation11_spill]]  ;;  %24 = sbr.rel (!%p22_p4) target bundleno = 9 (0x9), region = 155 }
0x133d   : > { %s3755_s21 = sld [smem:[#allocation12_spill]] }
0x1341   :  { %2392 = vsyncpa [#allocation4], 1 }
0x1342   :  { %2394 = vsyncpa [#allocation4 + $0x1], 1 }
0x1343   :  { %2395 = vsyncpa [#allocation5], 1 }
0x1344   :  { %2397 = vsyncpa [#allocation5 + $0x1], 1 }

</bundles_post_ra>
